<compile_context>
chip_gen: v5e
topology: v5e:2x2
jax: 0.10.0
libtpu: 0.0.40
codegen_flags: <defaults>
</compile_context>

<pallas_src>
import functools

import jax
import jax.numpy as jnp
from jax.experimental import pallas as pl
from jax.experimental.pallas import tpu as pltpu

LN_EPS = 1e-5


def _layernorm(x, gamma, beta):
    # x: (M, D) f32, gamma/beta: (1, D) f32. Matches torch.nn.LayerNorm (biased var).
    mean = jnp.mean(x, axis=-1, keepdims=True)
    xc = x - mean
    var = jnp.mean(xc * xc, axis=-1, keepdims=True)
    inv = jax.lax.rsqrt(var + LN_EPS)
    return xc * inv * gamma + beta


def _block_kernel(x_ref, *refs, n_head, seq_len, has_mask, compute_dtype):
    """One grid step: a (B_t*L, D) slab of tokens (B_t whole batch elements)."""
    if has_mask:
        mask_ref, refs = refs[0], refs[1:]
    else:
        mask_ref = None
    (ln1_g_ref, ln1_b_ref,
     in_wt_ref, in_b_ref,        # (D, 3D), (1, 3D)   pre-transposed qkv in_proj
     out_wt_ref, out_b_ref,      # (D, D),  (1, D)    pre-transposed attn out_proj
     ln2_g_ref, ln2_b_ref,
     fc_wt_ref, fc_b_ref,        # (D, 4D), (1, 4D)   pre-transposed mlp.c_fc
     pj_wt_ref, pj_b_ref,        # (4D, D), (1, D)    pre-transposed mlp.c_proj
     o_ref,                      # (M, D) output slab
     ctx_ref) = refs             # (M, D) VMEM scratch for attention context

    M, D = x_ref.shape
    L = seq_len
    bt = M // L                  # batch elements in this tile
    H = n_head
    dh = D // H
    scale = 1.0 / float(dh) ** 0.5
    cd = compute_dtype

    x = x_ref[...]                                            # (M, D) f32

    # ---- ln_1 (f32) ----
    x_ln = _layernorm(x, ln1_g_ref[...], ln1_b_ref[...])

    # ---- fused qkv projection: bf16 operands, f32 accumulation ----
    qkv = jnp.dot(x_ln.astype(cd), in_wt_ref[...],
                  preferred_element_type=jnp.float32) + in_b_ref[...]   # (M, 3D)

    mask = mask_ref[...] if has_mask else None                # (L, L) additive f32

    # ---- multi-head self-attention ----
    # Per (batch, head) matmuls; head outputs are written straight into the VMEM
    # scratch ctx_ref instead of a lane-wise concatenate.
    for b in range(bt):
        r0 = b * L
        for h in range(H):
            c0 = h * dh
            qh = qkv[r0:r0 + L, c0:c0 + dh].astype(cd)
            kh = qkv[r0:r0 + L, D + c0:D + c0 + dh].astype(cd)
            vh = qkv[r0:r0 + L, 2 * D + c0:2 * D + c0 + dh].astype(cd)

            s = jnp.dot(qh, kh.T, preferred_element_type=jnp.float32) * scale
            if has_mask:
                s = s + mask
            s = s - jnp.max(s, axis=-1, keepdims=True)
            p = jnp.exp(s)
            p = p * pl.reciprocal(jnp.sum(p, axis=-1, keepdims=True), approx=True)

            ctx_ref[r0:r0 + L, c0:c0 + dh] = jnp.dot(
                p.astype(cd), vh, preferred_element_type=jnp.float32).astype(cd)

    attn_out = jnp.dot(ctx_ref[...], out_wt_ref[...],
                       preferred_element_type=jnp.float32) + out_b_ref[...]

    # ---- residual 1 ----
    x1 = x + attn_out

    # ---- ln_2 + MLP (QuickGELU) ----
    x1_ln = _layernorm(x1, ln2_g_ref[...], ln2_b_ref[...])
    hmid = jnp.dot(x1_ln.astype(cd), fc_wt_ref[...],
                   preferred_element_type=jnp.float32) + fc_b_ref[...]
    hmid = hmid * jax.nn.sigmoid(1.702 * hmid)                # QuickGELU in f32
    # TODO(synk): nn.Dropout layers are identity at inference; no RNG applied.
    y = jnp.dot(hmid.astype(cd), pj_wt_ref[...],
                preferred_element_type=jnp.float32) + pj_b_ref[...]

    # ---- residual 2 ----
    o_ref[...] = x1 + y


def _pick_block_batch(n_batch, seq_len, row_target=256):
    """Pick batch-tile size: aim for >=~256 GEMM rows (fills v6e/v7x MXU; 128 is
    already enough on v5e) while keeping at least 2 grid steps so both v7x
    TensorCores get work."""
    target = max(1, -(-row_target // seq_len))       # ceil(row_target / L)
    candidates = [b for b in range(1, n_batch + 1)
                  if n_batch % b == 0 and b <= target]
    multi = [b for b in candidates if n_batch // b >= 2]
    pool = multi if multi else candidates
    return max(pool) if pool else 1


def _const_spec(a):
    """Full-array, constant-index BlockSpec; single-buffered so the operand is
    loaded once and stays VMEM-resident across the batch grid."""
    idx = lambda b: (0,) * a.ndim
    try:
        return pl.BlockSpec(a.shape, idx, pipeline_mode=pl.Buffered(1))
    except Exception:  # older API without pipeline_mode / Buffered
        return pl.BlockSpec(a.shape, idx)


def residual_attention_block(x, params, *, n_head, attn_mask=None,
                             compute_dtype=jnp.bfloat16, block_batch=None):
    """x: (L, N, D). Returns (L, N, D) float32 (module casts to fp32)."""
    L, N, D = x.shape
    assert D % n_head == 0
    x32 = x.astype(jnp.float32)

    if block_batch is None:
        block_batch = _pick_block_batch(N, L)
    assert N % block_batch == 0
    num_tiles = N // block_batch
    M = block_batch * L

    # (L, N, D) -> (N*L, D): rows grouped by batch element, token-major inside.
    xb = jnp.transpose(x32, (1, 0, 2)).reshape(N * L, D)

    has_mask = attn_mask is not None
    if has_mask:
        if jnp.issubdtype(attn_mask.dtype, jnp.bool_):
            # PyTorch bool attn_mask semantics: True = position is NOT allowed.
            mask = jnp.where(attn_mask, jnp.float32(-jnp.inf), jnp.float32(0.0))
        else:
            mask = attn_mask.astype(jnp.float32)
    else:
        mask = None

    def row(v):
        return v.reshape(1, -1).astype(jnp.float32)

    wd = compute_dtype
    # Pre-transposed (lane-dense RHS) low-precision weights; f32 biases / LN params.
    weights = (
        row(params["ln1_g"]), row(params["ln1_b"]),
        params["in_w"].T.astype(wd),  row(params["in_b"]),
        params["out_w"].T.astype(wd), row(params["out_b"]),
        row(params["ln2_g"]), row(params["ln2_b"]),
        params["fc_w"].T.astype(wd),  row(params["fc_b"]),
        params["pj_w"].T.astype(wd),  row(params["pj_b"]),
    )

    in_specs = [pl.BlockSpec((M, D), lambda b: (b, 0))]       # activation slab
    call_args = [xb]
    if has_mask:
        in_specs.append(_const_spec(mask))
        call_args.append(mask)
    in_specs += [_const_spec(w) for w in weights]
    call_args += list(weights)

    out = pl.pallas_call(
        functools.partial(_block_kernel, n_head=n_head, seq_len=L,
                          has_mask=has_mask, compute_dtype=compute_dtype),
        out_shape=jax.ShapeDtypeStruct((N * L, D), jnp.float32),
        grid=(num_tiles,),
        in_specs=in_specs,
        out_specs=pl.BlockSpec((M, D), lambda b: (b, 0)),
        scratch_shapes=[pltpu.VMEM((M, D), compute_dtype)],
        compiler_params=pltpu.CompilerParams(
            dimension_semantics=("parallel",),
            vmem_limit_bytes=64 * 1024 * 1024),
    )(*call_args)

    return out.reshape(N, L, D).transpose(1, 0, 2)            # back to (L, N, D)


# ------------------------- pure-JAX reference -------------------------
def _reference(x, params, n_head, attn_mask=None):
    x = x.astype(jnp.float32)                  # (L, N, D)
    L, N, D = x.shape
    dh = D // n_head

    def ln(v, g, b):
        m = v.mean(-1, keepdims=True)
        var = ((v - m) ** 2).mean(-1, keepdims=True)
        return (v - m) / jnp.sqrt(var + LN_EPS) * g + b

    x_ln = ln(x, params["ln1_g"], params["ln1_b"])
    qkv = x_ln @ params["in_w"].T + params["in_b"]
    q, k, v = jnp.split(qkv, 3, axis=-1)

    def heads(t):  # (L, N, D) -> (N, H, L, dh)
        return t.reshape(L, N, n_head, dh).transpose(1, 2, 0, 3)

    qh, kh, vh = heads(q), heads(k), heads(v)
    scores = jnp.einsum("nhld,nhmd->nhlm", qh, kh) / (dh ** 0.5)
    if attn_mask is not None:
        scores = scores + attn_mask
    p = jax.nn.softmax(scores, axis=-1)
    ctx = jnp.einsum("nhlm,nhmd->nhld", p, vh)
    ctx = ctx.transpose(2, 0, 1, 3).reshape(L, N, D)
    attn_out = ctx @ params["out_w"].T + params["out_b"]

    x1 = x + attn_out
    x1_ln = ln(x1, params["ln2_g"], params["ln2_b"])
    h = x1_ln @ params["fc_w"].T + params["fc_b"]
    h = h * jax.nn.sigmoid(1.702 * h)
    y = h @ params["pj_w"].T + params["pj_b"]
    return x1 + y


def _init_params(key, d_model):
    ks = jax.random.split(key, 8)
    s = 0.02
    return {
        "ln1_g": jnp.ones((d_model,), jnp.float32),
        "ln1_b": jnp.zeros((d_model,), jnp.float32),
        "in_w": s * jax.random.normal(ks[0], (3 * d_model, d_model), jnp.float32),
        "in_b": s * jax.random.normal(ks[1], (3 * d_model,), jnp.float32),
        "out_w": s * jax.random.normal(ks[2], (d_model, d_model), jnp.float32),
        "out_b": s * jax.random.normal(ks[3], (d_model,), jnp.float32),
        "ln2_g": jnp.ones((d_model,), jnp.float32),
        "ln2_b": jnp.zeros((d_model,), jnp.float32),
        "fc_w": s * jax.random.normal(ks[4], (4 * d_model, d_model), jnp.float32),
        "fc_b": s * jax.random.normal(ks[5], (4 * d_model,), jnp.float32),
        "pj_w": s * jax.random.normal(ks[6], (d_model, 4 * d_model), jnp.float32),
        "pj_b": s * jax.random.normal(ks[7], (d_model,), jnp.float32),
    }


if __name__ == "__main__":
    L, N, D, H = 8, 4, 32, 4                   # seq, batch, d_model, heads
    key = jax.random.PRNGKey(0)
    kx, kp = jax.random.split(key)
    x = jax.random.normal(kx, (L, N, D), jnp.float32)
    params = _init_params(kp, D)

    # bf16 MXU operands / f32 accumulation -> compare to f32 reference with a
    # mixed-precision-appropriate tolerance.
    TOL = 2e-2

    # ---- no attention mask (e.g. CLIP vision tower) ----
    out = residual_attention_block(x, params, n_head=H, attn_mask=None)
    out = jax.block_until_ready(out)
    ref = _reference(x, params, H, attn_mask=None)
    assert out.shape == (L, N, D) and out.dtype == jnp.float32
    assert jnp.allclose(out, ref, atol=TOL, rtol=TOL), "mismatch vs reference (no mask)"

    # ---- causal additive mask (e.g. CLIP text tower) ----
    causal = jnp.where(jnp.triu(jnp.ones((L, L), dtype=bool), k=1),
                       jnp.float32(-jnp.inf), jnp.float32(0.0))
    out_m = residual_attention_block(x, params, n_head=H, attn_mask=causal)
    out_m = jax.block_until_ready(out_m)
    ref_m = _reference(x, params, H, attn_mask=causal)
    assert jnp.allclose(out_m, ref_m, atol=TOL, rtol=TOL), "mismatch vs reference (mask)"

    print("KERNEL_OK")
</pallas_src>

<mosaic_0001>
module attributes {stable_mosaic.version = 11 : i64} {
  func.func @_block_kernel(%arg0: i32, %arg1: memref<16x32xf32, #tpu.memory_space<vmem>>, %arg2: memref<1x32xf32, #tpu.memory_space<vmem>>, %arg3: memref<1x32xf32, #tpu.memory_space<vmem>>, %arg4: memref<32x96xbf16, #tpu.memory_space<vmem>>, %arg5: memref<1x96xf32, #tpu.memory_space<vmem>>, %arg6: memref<32x32xbf16, #tpu.memory_space<vmem>>, %arg7: memref<1x32xf32, #tpu.memory_space<vmem>>, %arg8: memref<1x32xf32, #tpu.memory_space<vmem>>, %arg9: memref<1x32xf32, #tpu.memory_space<vmem>>, %arg10: memref<32x128xbf16, #tpu.memory_space<vmem>>, %arg11: memref<1x128xf32, #tpu.memory_space<vmem>>, %arg12: memref<128x32xbf16, #tpu.memory_space<vmem>>, %arg13: memref<1x32xf32, #tpu.memory_space<vmem>>, %arg14: memref<16x32xf32, #tpu.memory_space<vmem>>, %arg15: memref<16x32xbf16, #tpu.memory_space<vmem>>) attributes {dimension_semantics = [#tpu.dimension_semantics<parallel>], iteration_bounds = array<i64: 2>, scalar_prefetch = 0 : i64, scratch_operands = 1 : i64, tpu.core_type = #tpu.core_type<tc>, window_params = [{transform_indices = @transform_0, window_bounds = array<i64: 16, 32>}, {pipeline_mode = #tpu.pipeline_mode<synchronous>, transform_indices = @transform_1, window_bounds = array<i64: 1, 32>}, {pipeline_mode = #tpu.pipeline_mode<synchronous>, transform_indices = @transform_2, window_bounds = array<i64: 1, 32>}, {pipeline_mode = #tpu.pipeline_mode<synchronous>, transform_indices = @transform_3, window_bounds = array<i64: 32, 96>}, {pipeline_mode = #tpu.pipeline_mode<synchronous>, transform_indices = @transform_4, window_bounds = array<i64: 1, 96>}, {pipeline_mode = #tpu.pipeline_mode<synchronous>, transform_indices = @transform_5, window_bounds = array<i64: 32, 32>}, {pipeline_mode = #tpu.pipeline_mode<synchronous>, transform_indices = @transform_6, window_bounds = array<i64: 1, 32>}, {pipeline_mode = #tpu.pipeline_mode<synchronous>, transform_indices = @transform_7, window_bounds = array<i64: 1, 32>}, {pipeline_mode = #tpu.pipeline_mode<synchronous>, transform_indices = @transform_8, window_bounds = array<i64: 1, 32>}, {pipeline_mode = #tpu.pipeline_mode<synchronous>, transform_indices = @transform_9, window_bounds = array<i64: 32, 128>}, {pipeline_mode = #tpu.pipeline_mode<synchronous>, transform_indices = @transform_10, window_bounds = array<i64: 1, 128>}, {pipeline_mode = #tpu.pipeline_mode<synchronous>, transform_indices = @transform_11, window_bounds = array<i64: 128, 32>}, {pipeline_mode = #tpu.pipeline_mode<synchronous>, transform_indices = @transform_12, window_bounds = array<i64: 1, 32>}, {transform_indices = @transform_13, window_bounds = array<i64: 16, 32>}]} {
    %c0 = arith.constant 0 : index
    %c0_0 = arith.constant 0 : index
    %0 = vector.load %arg1[%c0, %c0_0] : memref<16x32xf32, #tpu.memory_space<vmem>>, vector<16x32xf32>
    %c0_1 = arith.constant 0 : index
    %c0_2 = arith.constant 0 : index
    %1 = vector.load %arg2[%c0_1, %c0_2] : memref<1x32xf32, #tpu.memory_space<vmem>>, vector<1x32xf32>
    %c0_3 = arith.constant 0 : index
    %c0_4 = arith.constant 0 : index
    %2 = vector.load %arg3[%c0_3, %c0_4] : memref<1x32xf32, #tpu.memory_space<vmem>>, vector<1x32xf32>
    %cst = arith.constant dense<0.000000e+00> : vector<16xf32>
    %3 = vector.multi_reduction <add>, %0, %cst [1] : vector<16x32xf32> to vector<16xf32>
    %4 = vector.shape_cast %3 : vector<16xf32> to vector<16x1xf32>
    %cst_5 = arith.constant 3.200000e+01 : f32
    %5 = vector.broadcast %cst_5 : f32 to vector<16x1xf32>
    %6 = arith.divf %4, %5 : vector<16x1xf32>
    %7 = vector.broadcast %6 : vector<16x1xf32> to vector<16x32xf32>
    %8 = arith.subf %0, %7 : vector<16x32xf32>
    %9 = arith.mulf %8, %8 : vector<16x32xf32>
    %cst_6 = arith.constant dense<0.000000e+00> : vector<16xf32>
    %10 = vector.multi_reduction <add>, %9, %cst_6 [1] : vector<16x32xf32> to vector<16xf32>
    %11 = vector.shape_cast %10 : vector<16xf32> to vector<16x1xf32>
    %cst_7 = arith.constant 3.200000e+01 : f32
    %12 = vector.broadcast %cst_7 : f32 to vector<16x1xf32>
    %13 = arith.divf %11, %12 : vector<16x1xf32>
    %cst_8 = arith.constant 9.99999974E-6 : f32
    %14 = vector.broadcast %cst_8 : f32 to vector<16x1xf32>
    %15 = arith.addf %13, %14 : vector<16x1xf32>
    %16 = math.rsqrt %15 : vector<16x1xf32>
    %17 = vector.broadcast %16 : vector<16x1xf32> to vector<16x32xf32>
    %18 = arith.mulf %8, %17 : vector<16x32xf32>
    %19 = vector.broadcast %1 : vector<1x32xf32> to vector<16x32xf32>
    %20 = arith.mulf %18, %19 : vector<16x32xf32>
    %21 = vector.broadcast %2 : vector<1x32xf32> to vector<16x32xf32>
    %22 = arith.addf %20, %21 : vector<16x32xf32>
    %23 = arith.truncf %22 : vector<16x32xf32> to vector<16x32xbf16>
    %c0_9 = arith.constant 0 : index
    %c0_10 = arith.constant 0 : index
    %24 = vector.load %arg4[%c0_9, %c0_10] : memref<32x96xbf16, #tpu.memory_space<vmem>>, vector<32x96xbf16>
    %cst_11 = arith.constant dense<0.000000e+00> : vector<16x96xf32>
    %25 = tpu.matmul %23, %24, %cst_11 {dimension_numbers = #tpu.dot_dimension_numbers<[1], [0], [0], [1], [0, 0, 1, 1], [], []>} : vector<16x32xbf16>, vector<32x96xbf16>, vector<16x96xf32> -> vector<16x96xf32>
    %c0_12 = arith.constant 0 : index
    %c0_13 = arith.constant 0 : index
    %26 = vector.load %arg5[%c0_12, %c0_13] : memref<1x96xf32, #tpu.memory_space<vmem>>, vector<1x96xf32>
    %27 = vector.broadcast %26 : vector<1x96xf32> to vector<16x96xf32>
    %28 = arith.addf %25, %27 : vector<16x96xf32>
    %29 = vector.extract_strided_slice %28 {offsets = [0, 0], sizes = [8, 8], strides = [1, 1]} : vector<16x96xf32> to vector<8x8xf32>
    %30 = arith.truncf %29 : vector<8x8xf32> to vector<8x8xbf16>
    %31 = vector.extract_strided_slice %28 {offsets = [0, 32], sizes = [8, 8], strides = [1, 1]} : vector<16x96xf32> to vector<8x8xf32>
    %32 = arith.truncf %31 : vector<8x8xf32> to vector<8x8xbf16>
    %33 = vector.extract_strided_slice %28 {offsets = [0, 64], sizes = [8, 8], strides = [1, 1]} : vector<16x96xf32> to vector<8x8xf32>
    %34 = arith.truncf %33 : vector<8x8xf32> to vector<8x8xbf16>
    %35 = tpu.transpose %32, [1, 0] : vector<8x8xbf16> -> vector<8x8xbf16>
    %cst_14 = arith.constant dense<0.000000e+00> : vector<8x8xf32>
    %36 = tpu.matmul %30, %35, %cst_14 {dimension_numbers = #tpu.dot_dimension_numbers<[1], [0], [0], [1], [0, 0, 1, 1], [], []>} : vector<8x8xbf16>, vector<8x8xbf16>, vector<8x8xf32> -> vector<8x8xf32>
    %cst_15 = arith.constant 0.353553385 : f32
    %37 = vector.broadcast %cst_15 : f32 to vector<8x8xf32>
    %38 = arith.mulf %36, %37 : vector<8x8xf32>
    %cst_16 = arith.constant dense<0xFF800000> : vector<8xf32>
    %39 = vector.multi_reduction <maximumf>, %38, %cst_16 [1] : vector<8x8xf32> to vector<8xf32>
    %40 = vector.shape_cast %39 : vector<8xf32> to vector<8x1xf32>
    %41 = vector.broadcast %40 : vector<8x1xf32> to vector<8x8xf32>
    %42 = arith.subf %38, %41 : vector<8x8xf32>
    %43 = math.exp %42 : vector<8x8xf32>
    %cst_17 = arith.constant dense<0.000000e+00> : vector<8xf32>
    %44 = vector.multi_reduction <add>, %43, %cst_17 [1] : vector<8x8xf32> to vector<8xf32>
    %45 = vector.shape_cast %44 : vector<8xf32> to vector<8x1xf32>
    %46 = tpu.reciprocal %45 {approx = true} : vector<8x1xf32> -> vector<8x1xf32>
    %47 = vector.broadcast %46 : vector<8x1xf32> to vector<8x8xf32>
    %48 = arith.mulf %43, %47 : vector<8x8xf32>
    %49 = arith.truncf %48 : vector<8x8xf32> to vector<8x8xbf16>
    %cst_18 = arith.constant dense<0.000000e+00> : vector<8x8xf32>
    %50 = tpu.matmul %49, %34, %cst_18 {dimension_numbers = #tpu.dot_dimension_numbers<[1], [0], [0], [1], [0, 0, 1, 1], [], []>} : vector<8x8xbf16>, vector<8x8xbf16>, vector<8x8xf32> -> vector<8x8xf32>
    %51 = arith.truncf %50 : vector<8x8xf32> to vector<8x8xbf16>
    %c0_19 = arith.constant 0 : index
    %c0_20 = arith.constant 0 : index
    %52 = vector.load %arg15[%c0_19, %c0_20] : memref<16x32xbf16, #tpu.memory_space<vmem>>, vector<8x8xbf16>
    tpu.vector_store %arg15[%c0_19, %c0_20], %51 {strides = array<i32>} : memref<16x32xbf16, #tpu.memory_space<vmem>>, vector<8x8xbf16>,
    %53 = vector.extract_strided_slice %28 {offsets = [0, 8], sizes = [8, 8], strides = [1, 1]} : vector<16x96xf32> to vector<8x8xf32>
    %54 = arith.truncf %53 : vector<8x8xf32> to vector<8x8xbf16>
    %55 = vector.extract_strided_slice %28 {offsets = [0, 40], sizes = [8, 8], strides = [1, 1]} : vector<16x96xf32> to vector<8x8xf32>
    %56 = arith.truncf %55 : vector<8x8xf32> to vector<8x8xbf16>
    %57 = vector.extract_strided_slice %28 {offsets = [0, 72], sizes = [8, 8], strides = [1, 1]} : vector<16x96xf32> to vector<8x8xf32>
    %58 = arith.truncf %57 : vector<8x8xf32> to vector<8x8xbf16>
    %59 = tpu.transpose %56, [1, 0] : vector<8x8xbf16> -> vector<8x8xbf16>
    %cst_21 = arith.constant dense<0.000000e+00> : vector<8x8xf32>
    %60 = tpu.matmul %54, %59, %cst_21 {dimension_numbers = #tpu.dot_dimension_numbers<[1], [0], [0], [1], [0, 0, 1, 1], [], []>} : vector<8x8xbf16>, vector<8x8xbf16>, vector<8x8xf32> -> vector<8x8xf32>
    %cst_22 = arith.constant 0.353553385 : f32
    %61 = vector.broadcast %cst_22 : f32 to vector<8x8xf32>
    %62 = arith.mulf %60, %61 : vector<8x8xf32>
    %cst_23 = arith.constant dense<0xFF800000> : vector<8xf32>
    %63 = vector.multi_reduction <maximumf>, %62, %cst_23 [1] : vector<8x8xf32> to vector<8xf32>
    %64 = vector.shape_cast %63 : vector<8xf32> to vector<8x1xf32>
    %65 = vector.broadcast %64 : vector<8x1xf32> to vector<8x8xf32>
    %66 = arith.subf %62, %65 : vector<8x8xf32>
    %67 = math.exp %66 : vector<8x8xf32>
    %cst_24 = arith.constant dense<0.000000e+00> : vector<8xf32>
    %68 = vector.multi_reduction <add>, %67, %cst_24 [1] : vector<8x8xf32> to vector<8xf32>
    %69 = vector.shape_cast %68 : vector<8xf32> to vector<8x1xf32>
    %70 = tpu.reciprocal %69 {approx = true} : vector<8x1xf32> -> vector<8x1xf32>
    %71 = vector.broadcast %70 : vector<8x1xf32> to vector<8x8xf32>
    %72 = arith.mulf %67, %71 : vector<8x8xf32>
    %73 = arith.truncf %72 : vector<8x8xf32> to vector<8x8xbf16>
    %cst_25 = arith.constant dense<0.000000e+00> : vector<8x8xf32>
    %74 = tpu.matmul %73, %58, %cst_25 {dimension_numbers = #tpu.dot_dimension_numbers<[1], [0], [0], [1], [0, 0, 1, 1], [], []>} : vector<8x8xbf16>, vector<8x8xbf16>, vector<8x8xf32> -> vector<8x8xf32>
    %75 = arith.truncf %74 : vector<8x8xf32> to vector<8x8xbf16>
    %c0_26 = arith.constant 0 : index
    %c8 = arith.constant 8 : index
    %76 = vector.load %arg15[%c0_26, %c8] : memref<16x32xbf16, #tpu.memory_space<vmem>>, vector<8x8xbf16>
    tpu.vector_store %arg15[%c0_26, %c8], %75 {strides = array<i32>} : memref<16x32xbf16, #tpu.memory_space<vmem>>, vector<8x8xbf16>,
    %77 = vector.extract_strided_slice %28 {offsets = [0, 16], sizes = [8, 8], strides = [1, 1]} : vector<16x96xf32> to vector<8x8xf32>
    %78 = arith.truncf %77 : vector<8x8xf32> to vector<8x8xbf16>
    %79 = vector.extract_strided_slice %28 {offsets = [0, 48], sizes = [8, 8], strides = [1, 1]} : vector<16x96xf32> to vector<8x8xf32>
    %80 = arith.truncf %79 : vector<8x8xf32> to vector<8x8xbf16>
    %81 = vector.extract_strided_slice %28 {offsets = [0, 80], sizes = [8, 8], strides = [1, 1]} : vector<16x96xf32> to vector<8x8xf32>
    %82 = arith.truncf %81 : vector<8x8xf32> to vector<8x8xbf16>
    %83 = tpu.transpose %80, [1, 0] : vector<8x8xbf16> -> vector<8x8xbf16>
    %cst_27 = arith.constant dense<0.000000e+00> : vector<8x8xf32>
    %84 = tpu.matmul %78, %83, %cst_27 {dimension_numbers = #tpu.dot_dimension_numbers<[1], [0], [0], [1], [0, 0, 1, 1], [], []>} : vector<8x8xbf16>, vector<8x8xbf16>, vector<8x8xf32> -> vector<8x8xf32>
    %cst_28 = arith.constant 0.353553385 : f32
    %85 = vector.broadcast %cst_28 : f32 to vector<8x8xf32>
    %86 = arith.mulf %84, %85 : vector<8x8xf32>
    %cst_29 = arith.constant dense<0xFF800000> : vector<8xf32>
    %87 = vector.multi_reduction <maximumf>, %86, %cst_29 [1] : vector<8x8xf32> to vector<8xf32>
    %88 = vector.shape_cast %87 : vector<8xf32> to vector<8x1xf32>
    %89 = vector.broadcast %88 : vector<8x1xf32> to vector<8x8xf32>
    %90 = arith.subf %86, %89 : vector<8x8xf32>
    %91 = math.exp %90 : vector<8x8xf32>
    %cst_30 = arith.constant dense<0.000000e+00> : vector<8xf32>
    %92 = vector.multi_reduction <add>, %91, %cst_30 [1] : vector<8x8xf32> to vector<8xf32>
    %93 = vector.shape_cast %92 : vector<8xf32> to vector<8x1xf32>
    %94 = tpu.reciprocal %93 {approx = true} : vector<8x1xf32> -> vector<8x1xf32>
    %95 = vector.broadcast %94 : vector<8x1xf32> to vector<8x8xf32>
    %96 = arith.mulf %91, %95 : vector<8x8xf32>
    %97 = arith.truncf %96 : vector<8x8xf32> to vector<8x8xbf16>
    %cst_31 = arith.constant dense<0.000000e+00> : vector<8x8xf32>
    %98 = tpu.matmul %97, %82, %cst_31 {dimension_numbers = #tpu.dot_dimension_numbers<[1], [0], [0], [1], [0, 0, 1, 1], [], []>} : vector<8x8xbf16>, vector<8x8xbf16>, vector<8x8xf32> -> vector<8x8xf32>
    %99 = arith.truncf %98 : vector<8x8xf32> to vector<8x8xbf16>
    %c0_32 = arith.constant 0 : index
    %c16 = arith.constant 16 : index
    %100 = vector.load %arg15[%c0_32, %c16] : memref<16x32xbf16, #tpu.memory_space<vmem>>, vector<8x8xbf16>
    tpu.vector_store %arg15[%c0_32, %c16], %99 {strides = array<i32>} : memref<16x32xbf16, #tpu.memory_space<vmem>>, vector<8x8xbf16>,
    %101 = vector.extract_strided_slice %28 {offsets = [0, 24], sizes = [8, 8], strides = [1, 1]} : vector<16x96xf32> to vector<8x8xf32>
    %102 = arith.truncf %101 : vector<8x8xf32> to vector<8x8xbf16>
    %103 = vector.extract_strided_slice %28 {offsets = [0, 56], sizes = [8, 8], strides = [1, 1]} : vector<16x96xf32> to vector<8x8xf32>
    %104 = arith.truncf %103 : vector<8x8xf32> to vector<8x8xbf16>
    %105 = vector.extract_strided_slice %28 {offsets = [0, 88], sizes = [8, 8], strides = [1, 1]} : vector<16x96xf32> to vector<8x8xf32>
    %106 = arith.truncf %105 : vector<8x8xf32> to vector<8x8xbf16>
    %107 = tpu.transpose %104, [1, 0] : vector<8x8xbf16> -> vector<8x8xbf16>
    %cst_33 = arith.constant dense<0.000000e+00> : vector<8x8xf32>
    %108 = tpu.matmul %102, %107, %cst_33 {dimension_numbers = #tpu.dot_dimension_numbers<[1], [0], [0], [1], [0, 0, 1, 1], [], []>} : vector<8x8xbf16>, vector<8x8xbf16>, vector<8x8xf32> -> vector<8x8xf32>
    %cst_34 = arith.constant 0.353553385 : f32
    %109 = vector.broadcast %cst_34 : f32 to vector<8x8xf32>
    %110 = arith.mulf %108, %109 : vector<8x8xf32>
    %cst_35 = arith.constant dense<0xFF800000> : vector<8xf32>
    %111 = vector.multi_reduction <maximumf>, %110, %cst_35 [1] : vector<8x8xf32> to vector<8xf32>
    %112 = vector.shape_cast %111 : vector<8xf32> to vector<8x1xf32>
    %113 = vector.broadcast %112 : vector<8x1xf32> to vector<8x8xf32>
    %114 = arith.subf %110, %113 : vector<8x8xf32>
    %115 = math.exp %114 : vector<8x8xf32>
    %cst_36 = arith.constant dense<0.000000e+00> : vector<8xf32>
    %116 = vector.multi_reduction <add>, %115, %cst_36 [1] : vector<8x8xf32> to vector<8xf32>
    %117 = vector.shape_cast %116 : vector<8xf32> to vector<8x1xf32>
    %118 = tpu.reciprocal %117 {approx = true} : vector<8x1xf32> -> vector<8x1xf32>
    %119 = vector.broadcast %118 : vector<8x1xf32> to vector<8x8xf32>
    %120 = arith.mulf %115, %119 : vector<8x8xf32>
    %121 = arith.truncf %120 : vector<8x8xf32> to vector<8x8xbf16>
    %cst_37 = arith.constant dense<0.000000e+00> : vector<8x8xf32>
    %122 = tpu.matmul %121, %106, %cst_37 {dimension_numbers = #tpu.dot_dimension_numbers<[1], [0], [0], [1], [0, 0, 1, 1], [], []>} : vector<8x8xbf16>, vector<8x8xbf16>, vector<8x8xf32> -> vector<8x8xf32>
    %123 = arith.truncf %122 : vector<8x8xf32> to vector<8x8xbf16>
    %c0_38 = arith.constant 0 : index
    %c24 = arith.constant 24 : index
    %124 = vector.load %arg15[%c0_38, %c24] : memref<16x32xbf16, #tpu.memory_space<vmem>>, vector<8x8xbf16>
    tpu.vector_store %arg15[%c0_38, %c24], %123 {strides = array<i32>} : memref<16x32xbf16, #tpu.memory_space<vmem>>, vector<8x8xbf16>,
    %125 = vector.extract_strided_slice %28 {offsets = [8, 0], sizes = [8, 8], strides = [1, 1]} : vector<16x96xf32> to vector<8x8xf32>
    %126 = arith.truncf %125 : vector<8x8xf32> to vector<8x8xbf16>
    %127 = vector.extract_strided_slice %28 {offsets = [8, 32], sizes = [8, 8], strides = [1, 1]} : vector<16x96xf32> to vector<8x8xf32>
    %128 = arith.truncf %127 : vector<8x8xf32> to vector<8x8xbf16>
    %129 = vector.extract_strided_slice %28 {offsets = [8, 64], sizes = [8, 8], strides = [1, 1]} : vector<16x96xf32> to vector<8x8xf32>
    %130 = arith.truncf %129 : vector<8x8xf32> to vector<8x8xbf16>
    %131 = tpu.transpose %128, [1, 0] : vector<8x8xbf16> -> vector<8x8xbf16>
    %cst_39 = arith.constant dense<0.000000e+00> : vector<8x8xf32>
    %132 = tpu.matmul %126, %131, %cst_39 {dimension_numbers = #tpu.dot_dimension_numbers<[1], [0], [0], [1], [0, 0, 1, 1], [], []>} : vector<8x8xbf16>, vector<8x8xbf16>, vector<8x8xf32> -> vector<8x8xf32>
    %cst_40 = arith.constant 0.353553385 : f32
    %133 = vector.broadcast %cst_40 : f32 to vector<8x8xf32>
    %134 = arith.mulf %132, %133 : vector<8x8xf32>
    %cst_41 = arith.constant dense<0xFF800000> : vector<8xf32>
    %135 = vector.multi_reduction <maximumf>, %134, %cst_41 [1] : vector<8x8xf32> to vector<8xf32>
    %136 = vector.shape_cast %135 : vector<8xf32> to vector<8x1xf32>
    %137 = vector.broadcast %136 : vector<8x1xf32> to vector<8x8xf32>
    %138 = arith.subf %134, %137 : vector<8x8xf32>
    %139 = math.exp %138 : vector<8x8xf32>
    %cst_42 = arith.constant dense<0.000000e+00> : vector<8xf32>
    %140 = vector.multi_reduction <add>, %139, %cst_42 [1] : vector<8x8xf32> to vector<8xf32>
    %141 = vector.shape_cast %140 : vector<8xf32> to vector<8x1xf32>
    %142 = tpu.reciprocal %141 {approx = true} : vector<8x1xf32> -> vector<8x1xf32>
    %143 = vector.broadcast %142 : vector<8x1xf32> to vector<8x8xf32>
    %144 = arith.mulf %139, %143 : vector<8x8xf32>
    %145 = arith.truncf %144 : vector<8x8xf32> to vector<8x8xbf16>
    %cst_43 = arith.constant dense<0.000000e+00> : vector<8x8xf32>
    %146 = tpu.matmul %145, %130, %cst_43 {dimension_numbers = #tpu.dot_dimension_numbers<[1], [0], [0], [1], [0, 0, 1, 1], [], []>} : vector<8x8xbf16>, vector<8x8xbf16>, vector<8x8xf32> -> vector<8x8xf32>
    %147 = arith.truncf %146 : vector<8x8xf32> to vector<8x8xbf16>
    %c8_44 = arith.constant 8 : index
    %c0_45 = arith.constant 0 : index
    %148 = vector.load %arg15[%c8_44, %c0_45] : memref<16x32xbf16, #tpu.memory_space<vmem>>, vector<8x8xbf16>
    tpu.vector_store %arg15[%c8_44, %c0_45], %147 {strides = array<i32>} : memref<16x32xbf16, #tpu.memory_space<vmem>>, vector<8x8xbf16>,
    %149 = vector.extract_strided_slice %28 {offsets = [8, 8], sizes = [8, 8], strides = [1, 1]} : vector<16x96xf32> to vector<8x8xf32>
    %150 = arith.truncf %149 : vector<8x8xf32> to vector<8x8xbf16>
    %151 = vector.extract_strided_slice %28 {offsets = [8, 40], sizes = [8, 8], strides = [1, 1]} : vector<16x96xf32> to vector<8x8xf32>
    %152 = arith.truncf %151 : vector<8x8xf32> to vector<8x8xbf16>
    %153 = vector.extract_strided_slice %28 {offsets = [8, 72], sizes = [8, 8], strides = [1, 1]} : vector<16x96xf32> to vector<8x8xf32>
    %154 = arith.truncf %153 : vector<8x8xf32> to vector<8x8xbf16>
    %155 = tpu.transpose %152, [1, 0] : vector<8x8xbf16> -> vector<8x8xbf16>
    %cst_46 = arith.constant dense<0.000000e+00> : vector<8x8xf32>
    %156 = tpu.matmul %150, %155, %cst_46 {dimension_numbers = #tpu.dot_dimension_numbers<[1], [0], [0], [1], [0, 0, 1, 1], [], []>} : vector<8x8xbf16>, vector<8x8xbf16>, vector<8x8xf32> -> vector<8x8xf32>
    %cst_47 = arith.constant 0.353553385 : f32
    %157 = vector.broadcast %cst_47 : f32 to vector<8x8xf32>
    %158 = arith.mulf %156, %157 : vector<8x8xf32>
    %cst_48 = arith.constant dense<0xFF800000> : vector<8xf32>
    %159 = vector.multi_reduction <maximumf>, %158, %cst_48 [1] : vector<8x8xf32> to vector<8xf32>
    %160 = vector.shape_cast %159 : vector<8xf32> to vector<8x1xf32>
    %161 = vector.broadcast %160 : vector<8x1xf32> to vector<8x8xf32>
    %162 = arith.subf %158, %161 : vector<8x8xf32>
    %163 = math.exp %162 : vector<8x8xf32>
    %cst_49 = arith.constant dense<0.000000e+00> : vector<8xf32>
    %164 = vector.multi_reduction <add>, %163, %cst_49 [1] : vector<8x8xf32> to vector<8xf32>
    %165 = vector.shape_cast %164 : vector<8xf32> to vector<8x1xf32>
    %166 = tpu.reciprocal %165 {approx = true} : vector<8x1xf32> -> vector<8x1xf32>
    %167 = vector.broadcast %166 : vector<8x1xf32> to vector<8x8xf32>
    %168 = arith.mulf %163, %167 : vector<8x8xf32>
    %169 = arith.truncf %168 : vector<8x8xf32> to vector<8x8xbf16>
    %cst_50 = arith.constant dense<0.000000e+00> : vector<8x8xf32>
    %170 = tpu.matmul %169, %154, %cst_50 {dimension_numbers = #tpu.dot_dimension_numbers<[1], [0], [0], [1], [0, 0, 1, 1], [], []>} : vector<8x8xbf16>, vector<8x8xbf16>, vector<8x8xf32> -> vector<8x8xf32>
    %171 = arith.truncf %170 : vector<8x8xf32> to vector<8x8xbf16>
    %c8_51 = arith.constant 8 : index
    %c8_52 = arith.constant 8 : index
    %172 = vector.load %arg15[%c8_51, %c8_52] : memref<16x32xbf16, #tpu.memory_space<vmem>>, vector<8x8xbf16>
    tpu.vector_store %arg15[%c8_51, %c8_52], %171 {strides = array<i32>} : memref<16x32xbf16, #tpu.memory_space<vmem>>, vector<8x8xbf16>,
    %173 = vector.extract_strided_slice %28 {offsets = [8, 16], sizes = [8, 8], strides = [1, 1]} : vector<16x96xf32> to vector<8x8xf32>
    %174 = arith.truncf %173 : vector<8x8xf32> to vector<8x8xbf16>
    %175 = vector.extract_strided_slice %28 {offsets = [8, 48], sizes = [8, 8], strides = [1, 1]} : vector<16x96xf32> to vector<8x8xf32>
    %176 = arith.truncf %175 : vector<8x8xf32> to vector<8x8xbf16>
    %177 = vector.extract_strided_slice %28 {offsets = [8, 80], sizes = [8, 8], strides = [1, 1]} : vector<16x96xf32> to vector<8x8xf32>
    %178 = arith.truncf %177 : vector<8x8xf32> to vector<8x8xbf16>
    %179 = tpu.transpose %176, [1, 0] : vector<8x8xbf16> -> vector<8x8xbf16>
    %cst_53 = arith.constant dense<0.000000e+00> : vector<8x8xf32>
    %180 = tpu.matmul %174, %179, %cst_53 {dimension_numbers = #tpu.dot_dimension_numbers<[1], [0], [0], [1], [0, 0, 1, 1], [], []>} : vector<8x8xbf16>, vector<8x8xbf16>, vector<8x8xf32> -> vector<8x8xf32>
    %cst_54 = arith.constant 0.353553385 : f32
    %181 = vector.broadcast %cst_54 : f32 to vector<8x8xf32>
    %182 = arith.mulf %180, %181 : vector<8x8xf32>
    %cst_55 = arith.constant dense<0xFF800000> : vector<8xf32>
    %183 = vector.multi_reduction <maximumf>, %182, %cst_55 [1] : vector<8x8xf32> to vector<8xf32>
    %184 = vector.shape_cast %183 : vector<8xf32> to vector<8x1xf32>
    %185 = vector.broadcast %184 : vector<8x1xf32> to vector<8x8xf32>
    %186 = arith.subf %182, %185 : vector<8x8xf32>
    %187 = math.exp %186 : vector<8x8xf32>
    %cst_56 = arith.constant dense<0.000000e+00> : vector<8xf32>
    %188 = vector.multi_reduction <add>, %187, %cst_56 [1] : vector<8x8xf32> to vector<8xf32>
    %189 = vector.shape_cast %188 : vector<8xf32> to vector<8x1xf32>
    %190 = tpu.reciprocal %189 {approx = true} : vector<8x1xf32> -> vector<8x1xf32>
    %191 = vector.broadcast %190 : vector<8x1xf32> to vector<8x8xf32>
    %192 = arith.mulf %187, %191 : vector<8x8xf32>
    %193 = arith.truncf %192 : vector<8x8xf32> to vector<8x8xbf16>
    %cst_57 = arith.constant dense<0.000000e+00> : vector<8x8xf32>
    %194 = tpu.matmul %193, %178, %cst_57 {dimension_numbers = #tpu.dot_dimension_numbers<[1], [0], [0], [1], [0, 0, 1, 1], [], []>} : vector<8x8xbf16>, vector<8x8xbf16>, vector<8x8xf32> -> vector<8x8xf32>
    %195 = arith.truncf %194 : vector<8x8xf32> to vector<8x8xbf16>
    %c8_58 = arith.constant 8 : index
    %c16_59 = arith.constant 16 : index
    %196 = vector.load %arg15[%c8_58, %c16_59] : memref<16x32xbf16, #tpu.memory_space<vmem>>, vector<8x8xbf16>
    tpu.vector_store %arg15[%c8_58, %c16_59], %195 {strides = array<i32>} : memref<16x32xbf16, #tpu.memory_space<vmem>>, vector<8x8xbf16>,
    %197 = vector.extract_strided_slice %28 {offsets = [8, 24], sizes = [8, 8], strides = [1, 1]} : vector<16x96xf32> to vector<8x8xf32>
    %198 = arith.truncf %197 : vector<8x8xf32> to vector<8x8xbf16>
    %199 = vector.extract_strided_slice %28 {offsets = [8, 56], sizes = [8, 8], strides = [1, 1]} : vector<16x96xf32> to vector<8x8xf32>
    %200 = arith.truncf %199 : vector<8x8xf32> to vector<8x8xbf16>
    %201 = vector.extract_strided_slice %28 {offsets = [8, 88], sizes = [8, 8], strides = [1, 1]} : vector<16x96xf32> to vector<8x8xf32>
    %202 = arith.truncf %201 : vector<8x8xf32> to vector<8x8xbf16>
    %203 = tpu.transpose %200, [1, 0] : vector<8x8xbf16> -> vector<8x8xbf16>
    %cst_60 = arith.constant dense<0.000000e+00> : vector<8x8xf32>
    %204 = tpu.matmul %198, %203, %cst_60 {dimension_numbers = #tpu.dot_dimension_numbers<[1], [0], [0], [1], [0, 0, 1, 1], [], []>} : vector<8x8xbf16>, vector<8x8xbf16>, vector<8x8xf32> -> vector<8x8xf32>
    %cst_61 = arith.constant 0.353553385 : f32
    %205 = vector.broadcast %cst_61 : f32 to vector<8x8xf32>
    %206 = arith.mulf %204, %205 : vector<8x8xf32>
    %cst_62 = arith.constant dense<0xFF800000> : vector<8xf32>
    %207 = vector.multi_reduction <maximumf>, %206, %cst_62 [1] : vector<8x8xf32> to vector<8xf32>
    %208 = vector.shape_cast %207 : vector<8xf32> to vector<8x1xf32>
    %209 = vector.broadcast %208 : vector<8x1xf32> to vector<8x8xf32>
    %210 = arith.subf %206, %209 : vector<8x8xf32>
    %211 = math.exp %210 : vector<8x8xf32>
    %cst_63 = arith.constant dense<0.000000e+00> : vector<8xf32>
    %212 = vector.multi_reduction <add>, %211, %cst_63 [1] : vector<8x8xf32> to vector<8xf32>
    %213 = vector.shape_cast %212 : vector<8xf32> to vector<8x1xf32>
    %214 = tpu.reciprocal %213 {approx = true} : vector<8x1xf32> -> vector<8x1xf32>
    %215 = vector.broadcast %214 : vector<8x1xf32> to vector<8x8xf32>
    %216 = arith.mulf %211, %215 : vector<8x8xf32>
    %217 = arith.truncf %216 : vector<8x8xf32> to vector<8x8xbf16>
    %cst_64 = arith.constant dense<0.000000e+00> : vector<8x8xf32>
    %218 = tpu.matmul %217, %202, %cst_64 {dimension_numbers = #tpu.dot_dimension_numbers<[1], [0], [0], [1], [0, 0, 1, 1], [], []>} : vector<8x8xbf16>, vector<8x8xbf16>, vector<8x8xf32> -> vector<8x8xf32>
    %219 = arith.truncf %218 : vector<8x8xf32> to vector<8x8xbf16>
    %c8_65 = arith.constant 8 : index
    %c24_66 = arith.constant 24 : index
    %220 = vector.load %arg15[%c8_65, %c24_66] : memref<16x32xbf16, #tpu.memory_space<vmem>>, vector<8x8xbf16>
    tpu.vector_store %arg15[%c8_65, %c24_66], %219 {strides = array<i32>} : memref<16x32xbf16, #tpu.memory_space<vmem>>, vector<8x8xbf16>,
    %c0_67 = arith.constant 0 : index
    %c0_68 = arith.constant 0 : index
    %221 = vector.load %arg15[%c0_67, %c0_68] : memref<16x32xbf16, #tpu.memory_space<vmem>>, vector<16x32xbf16>
    %c0_69 = arith.constant 0 : index
    %c0_70 = arith.constant 0 : index
    %222 = vector.load %arg6[%c0_69, %c0_70] : memref<32x32xbf16, #tpu.memory_space<vmem>>, vector<32x32xbf16>
    %cst_71 = arith.constant dense<0.000000e+00> : vector<16x32xf32>
    %223 = tpu.matmul %221, %222, %cst_71 {dimension_numbers = #tpu.dot_dimension_numbers<[1], [0], [0], [1], [0, 0, 1, 1], [], []>} : vector<16x32xbf16>, vector<32x32xbf16>, vector<16x32xf32> -> vector<16x32xf32>
    %c0_72 = arith.constant 0 : index
    %c0_73 = arith.constant 0 : index
    %224 = vector.load %arg7[%c0_72, %c0_73] : memref<1x32xf32, #tpu.memory_space<vmem>>, vector<1x32xf32>
    %225 = vector.broadcast %224 : vector<1x32xf32> to vector<16x32xf32>
    %226 = arith.addf %223, %225 : vector<16x32xf32>
    %227 = arith.addf %0, %226 : vector<16x32xf32>
    %c0_74 = arith.constant 0 : index
    %c0_75 = arith.constant 0 : index
    %228 = vector.load %arg8[%c0_74, %c0_75] : memref<1x32xf32, #tpu.memory_space<vmem>>, vector<1x32xf32>
    %c0_76 = arith.constant 0 : index
    %c0_77 = arith.constant 0 : index
    %229 = vector.load %arg9[%c0_76, %c0_77] : memref<1x32xf32, #tpu.memory_space<vmem>>, vector<1x32xf32>
    %cst_78 = arith.constant dense<0.000000e+00> : vector<16xf32>
    %230 = vector.multi_reduction <add>, %227, %cst_78 [1] : vector<16x32xf32> to vector<16xf32>
    %231 = vector.shape_cast %230 : vector<16xf32> to vector<16x1xf32>
    %cst_79 = arith.constant 3.200000e+01 : f32
    %232 = vector.broadcast %cst_79 : f32 to vector<16x1xf32>
    %233 = arith.divf %231, %232 : vector<16x1xf32>
    %234 = vector.broadcast %233 : vector<16x1xf32> to vector<16x32xf32>
    %235 = arith.subf %227, %234 : vector<16x32xf32>
    %236 = arith.mulf %235, %235 : vector<16x32xf32>
    %cst_80 = arith.constant dense<0.000000e+00> : vector<16xf32>
    %237 = vector.multi_reduction <add>, %236, %cst_80 [1] : vector<16x32xf32> to vector<16xf32>
    %238 = vector.shape_cast %237 : vector<16xf32> to vector<16x1xf32>
    %cst_81 = arith.constant 3.200000e+01 : f32
    %239 = vector.broadcast %cst_81 : f32 to vector<16x1xf32>
    %240 = arith.divf %238, %239 : vector<16x1xf32>
    %cst_82 = arith.constant 9.99999974E-6 : f32
    %241 = vector.broadcast %cst_82 : f32 to vector<16x1xf32>
    %242 = arith.addf %240, %241 : vector<16x1xf32>
    %243 = math.rsqrt %242 : vector<16x1xf32>
    %244 = vector.broadcast %243 : vector<16x1xf32> to vector<16x32xf32>
    %245 = arith.mulf %235, %244 : vector<16x32xf32>
    %246 = vector.broadcast %228 : vector<1x32xf32> to vector<16x32xf32>
    %247 = arith.mulf %245, %246 : vector<16x32xf32>
    %248 = vector.broadcast %229 : vector<1x32xf32> to vector<16x32xf32>
    %249 = arith.addf %247, %248 : vector<16x32xf32>
    %250 = arith.truncf %249 : vector<16x32xf32> to vector<16x32xbf16>
    %c0_83 = arith.constant 0 : index
    %c0_84 = arith.constant 0 : index
    %251 = vector.load %arg10[%c0_83, %c0_84] : memref<32x128xbf16, #tpu.memory_space<vmem>>, vector<32x128xbf16>
    %cst_85 = arith.constant dense<0.000000e+00> : vector<16x128xf32>
    %252 = tpu.matmul %250, %251, %cst_85 {dimension_numbers = #tpu.dot_dimension_numbers<[1], [0], [0], [1], [0, 0, 1, 1], [], []>} : vector<16x32xbf16>, vector<32x128xbf16>, vector<16x128xf32> -> vector<16x128xf32>
    %c0_86 = arith.constant 0 : index
    %c0_87 = arith.constant 0 : index
    %253 = vector.load %arg11[%c0_86, %c0_87] : memref<1x128xf32, #tpu.memory_space<vmem>>, vector<1x128xf32>
    %254 = vector.broadcast %253 : vector<1x128xf32> to vector<16x128xf32>
    %255 = arith.addf %252, %254 : vector<16x128xf32>
    %cst_88 = arith.constant 1.702000e+00 : f32
    %256 = vector.broadcast %cst_88 : f32 to vector<16x128xf32>
    %257 = arith.mulf %256, %255 : vector<16x128xf32>
    %258 = arith.negf %257 : vector<16x128xf32>
    %259 = math.exp %258 : vector<16x128xf32>
    %cst_89 = arith.constant 1.000000e+00 : f32
    %260 = vector.broadcast %cst_89 : f32 to vector<16x128xf32>
    %261 = arith.addf %260, %259 : vector<16x128xf32>
    %262 = arith.divf %260, %261 : vector<16x128xf32>
    %263 = arith.mulf %255, %262 : vector<16x128xf32>
    %264 = arith.truncf %263 : vector<16x128xf32> to vector<16x128xbf16>
    %c0_90 = arith.constant 0 : index
    %c0_91 = arith.constant 0 : index
    %265 = vector.load %arg12[%c0_90, %c0_91] : memref<128x32xbf16, #tpu.memory_space<vmem>>, vector<128x32xbf16>
    %cst_92 = arith.constant dense<0.000000e+00> : vector<16x32xf32>
    %266 = tpu.matmul %264, %265, %cst_92 {dimension_numbers = #tpu.dot_dimension_numbers<[1], [0], [0], [1], [0, 0, 1, 1], [], []>} : vector<16x128xbf16>, vector<128x32xbf16>, vector<16x32xf32> -> vector<16x32xf32>
    %c0_93 = arith.constant 0 : index
    %c0_94 = arith.constant 0 : index
    %267 = vector.load %arg13[%c0_93, %c0_94] : memref<1x32xf32, #tpu.memory_space<vmem>>, vector<1x32xf32>
    %268 = vector.broadcast %267 : vector<1x32xf32> to vector<16x32xf32>
    %269 = arith.addf %266, %268 : vector<16x32xf32>
    %270 = arith.addf %227, %269 : vector<16x32xf32>
    %c0_95 = arith.constant 0 : index
    %c0_96 = arith.constant 0 : index
    %271 = vector.load %arg14[%c0_95, %c0_96] : memref<16x32xf32, #tpu.memory_space<vmem>>, vector<16x32xf32>
    tpu.vector_store %arg14[%c0_95, %c0_96], %270 {strides = array<i32>} : memref<16x32xf32, #tpu.memory_space<vmem>>, vector<16x32xf32>,
    return
  }
  func.func @transform_0(%arg0: i32) -> (i32, i32) {
    %c0_i32 = arith.constant 0 : i32
    %c0_i32_0 = arith.constant 0 : i32
    return %arg0, %c0_i32 : i32, i32
  }
  func.func @transform_1(%arg0: i32) -> (i32, i32) {
    %c0_i32 = arith.constant 0 : i32
    %c0_i32_0 = arith.constant 0 : i32
    %c0_i32_1 = arith.constant 0 : i32
    return %c0_i32, %c0_i32_0 : i32, i32
  }
  func.func @transform_2(%arg0: i32) -> (i32, i32) {
    %c0_i32 = arith.constant 0 : i32
    %c0_i32_0 = arith.constant 0 : i32
    %c0_i32_1 = arith.constant 0 : i32
    return %c0_i32, %c0_i32_0 : i32, i32
  }
  func.func @transform_3(%arg0: i32) -> (i32, i32) {
    %c0_i32 = arith.constant 0 : i32
    %c0_i32_0 = arith.constant 0 : i32
    %c0_i32_1 = arith.constant 0 : i32
    return %c0_i32, %c0_i32_0 : i32, i32
  }
  func.func @transform_4(%arg0: i32) -> (i32, i32) {
    %c0_i32 = arith.constant 0 : i32
    %c0_i32_0 = arith.constant 0 : i32
    %c0_i32_1 = arith.constant 0 : i32
    return %c0_i32, %c0_i32_0 : i32, i32
  }
  func.func @transform_5(%arg0: i32) -> (i32, i32) {
    %c0_i32 = arith.constant 0 : i32
    %c0_i32_0 = arith.constant 0 : i32
    %c0_i32_1 = arith.constant 0 : i32
    return %c0_i32, %c0_i32_0 : i32, i32
  }
  func.func @transform_6(%arg0: i32) -> (i32, i32) {
    %c0_i32 = arith.constant 0 : i32
    %c0_i32_0 = arith.constant 0 : i32
    %c0_i32_1 = arith.constant 0 : i32
    return %c0_i32, %c0_i32_0 : i32, i32
  }
  func.func @transform_7(%arg0: i32) -> (i32, i32) {
    %c0_i32 = arith.constant 0 : i32
    %c0_i32_0 = arith.constant 0 : i32
    %c0_i32_1 = arith.constant 0 : i32
    return %c0_i32, %c0_i32_0 : i32, i32
  }
  func.func @transform_8(%arg0: i32) -> (i32, i32) {
    %c0_i32 = arith.constant 0 : i32
    %c0_i32_0 = arith.constant 0 : i32
    %c0_i32_1 = arith.constant 0 : i32
    return %c0_i32, %c0_i32_0 : i32, i32
  }
  func.func @transform_9(%arg0: i32) -> (i32, i32) {
    %c0_i32 = arith.constant 0 : i32
    %c0_i32_0 = arith.constant 0 : i32
    %c0_i32_1 = arith.constant 0 : i32
    return %c0_i32, %c0_i32_0 : i32, i32
  }
  func.func @transform_10(%arg0: i32) -> (i32, i32) {
    %c0_i32 = arith.constant 0 : i32
    %c0_i32_0 = arith.constant 0 : i32
    %c0_i32_1 = arith.constant 0 : i32
    return %c0_i32, %c0_i32_0 : i32, i32
  }
  func.func @transform_11(%arg0: i32) -> (i32, i32) {
    %c0_i32 = arith.constant 0 : i32
    %c0_i32_0 = arith.constant 0 : i32
    %c0_i32_1 = arith.constant 0 : i32
    return %c0_i32, %c0_i32_0 : i32, i32
  }
  func.func @transform_12(%arg0: i32) -> (i32, i32) {
    %c0_i32 = arith.constant 0 : i32
    %c0_i32_0 = arith.constant 0 : i32
    %c0_i32_1 = arith.constant 0 : i32
    return %c0_i32, %c0_i32_0 : i32, i32
  }
  func.func @transform_13(%arg0: i32) -> (i32, i32) {
    %c0_i32 = arith.constant 0 : i32
    %c0_i32_0 = arith.constant 0 : i32
    return %arg0, %c0_i32 : i32, i32
  }
}

</mosaic_0001>

<bundles_post_ra>
// kernel: tpu_custom_call.1
= control target key start
LH: loop header
LB: loop body
LE: loop exit
PB: predicated region body
PF: predicated region fallthrough
CT: control target
= control target key end

     0   :  { %s2144_s0 = inlined_call_operand.vmem [shape: f32[32,32], index: 0, kind: input, shape index: {}]   ;;  %s2145_s1 = inlined_call_operand.hbm [shape: f32[1,32], index: 1, kind: input, shape index: {}]   ;;  %s2146_s2 = inlined_call_operand.vmem [shape: f32[1,32], index: 2, kind: input, shape index: {}]   ;;  %s2147_s3 = inlined_call_operand.vmem [shape: bf16[32,96], index: 3, kind: input, shape index: {}]   ;;  %s2148_s4 = inlined_call_operand.vmem [shape: f32[1,96], index: 4, kind: input, shape index: {}]   ;;  %s2149_s5 = inlined_call_operand.vmem [shape: bf16[32,32], index: 5, kind: input, shape index: {}]   ;;  %s2150_s6 = inlined_call_operand.vmem [shape: f32[1,32], index: 6, kind: input, shape index: {}]   ;;  %s2151_s7 = inlined_call_operand.vmem [shape: f32[1,32], index: 7, kind: input, shape index: {}]   ;;  %s2152_s8 = inlined_call_operand.vmem [shape: f32[1,32], index: 8, kind: input, shape index: {}]   ;;  %s2153_s9 = inlined_call_operand.vmem [shape: bf16[32,128], index: 9, kind: input, shape index: {}]   ;;  %s2154_s10 = inlined_call_operand.vmem [shape: f32[1,128], index: 10, kind: input, shape index: {}]   ;;  %s2155_s11 = inlined_call_operand.vmem [shape: bf16[128,32], index: 11, kind: input, shape index: {}]   ;;  %s2156_s12 = inlined_call_operand.vmem [shape: f32[1,32], index: 12, kind: input, shape index: {}]   ;;  %s2157_s13 = inlined_call_operand.hbm [shape: f32[32,32], index: 13, kind: output, shape index: {}]  }
   0x1   :  { %2159 = sst [smem:[#allocation10_spill]] %s2144_s0 }
   0x2   :  { %2160 = sst [smem:[#allocation11_spill]] %s2145_s1 }
   0x3   :  { %18 = vsyncpa [#allocation4], 0 }
   0x4   :  { %19 = vsyncpa [#allocation5], 0 }
   0x5   :  { %21 = vsyncpa [#allocation5 + $0x1], 0  ;;  %s1843_s25 = smov 0   ;;  %s1845_s26 = smov 0  }
   0x6   :  { %s1847_s27 = smov 0   ;;  %s1849_s28 = smov 0  }
   0x7 LB: > { %s1864_s29 = sadd.s32 4294967295, %s1754_s28   ;;  %s1423_s30 = sadd.s32 4294967294, %s1754_s28   ;;  %s1754_s28 = sphi %s1849_s28, %s2171_s28   ;;  %s1750_s27 = sphi %s1847_s27, %s2170_s27   ;;  %s1746_s26 = sphi %s1845_s26, %s2169_s26   ;;  %s1742_s25 = sphi %s1843_s25, %s2168_s25  }
   0x8   : > { %s1868_s14 = sadd.s32 1, %s1754_s28   ;;  %s312_s15 = sadd.s32 1, %s1750_s27 }
   0x9   : > { %s309_s16 = ssub.s32 %s1754_s28, %s1868_s14  ;;  %p322_p0 = scmp.ne.s32.totalorder %s1750_s27, %s1746_s26 }
   0xa   : > { %p310_p1 = scmp.eq.s32.totalorder %s309_s16, 0  ;;  %p323_p2 = scmp.eq.s32.totalorder %s1864_s29, 1 }
   0xb   : > { %p328_p3 = scmp.ne.s32.totalorder %s1746_s26, %s1742_s25  ;;  %p329_p4 = scmp.eq.s32.totalorder %s1423_s30, 1 }
   0xc   : > { %s1879_s17 = scalar_select %p310_p1, %s1750_s27, %s312_s15  }
   0xd   : > { %p1881_p5 = por %p323_p2, %p322_p0  ;;  %p1885_p6 = por %p329_p4, %p328_p3 }
   0xe   : > { %2161 = sst [smem:[#allocation9_spill]] %s1879_s17  ;;  %p1424_p7 = scmp.ge.s32.totalorder %s1754_s28, 1 }
   0xf   : > { %p336_p8 = scmp.lt.s32.totalorder %s1754_s28, 3  ;;  %p1548_p9 = scmp.eq.s32.totalorder %s1864_s29, 0 }
  0x10   : > { %s2164_s1 = sld [smem:[#allocation11_spill]]  ;;  %s1756_s23 = smov [#allocation3]  }
  0x11   : > { %p337_p10 = pnand %p1424_p7, %p336_p8  ;;  %s350_s24 = sshll.u32 %s1756_s23, 4  ;;  %s351_s24 = int_to_ptr.vmem [resolvable:$true] %s350_s24 }
  0x13   : > { %p1540_p11 = pneg %p337_p10  ;;  %405 = sbr.rel (%p337_p10) target bundleno = 2381 (0x94d), region = 72 }
  0x15   : > { %p1541_p12 = pnand %p1548_p9, %p1540_p11 }
  0x16   : > { %s348_s22 = sshll.u32 %s2164_s1, 4  ;;  %s349_s22 = int_to_ptr.hbm [resolvable:$true] %s348_s22 }
  0x17   : > { %1543 = dma.hbm_to_vmem [thread:$0]  (!%p1541_p12), %s349_s22, 16, %s351_s24, [#allocation4]  }
  0x18   : > { %1733 = dma.done.wait (%p1548_p9), [#allocation4], 16  }
  0x19   : > { %1735 = vsyncadd (%p1548_p9), [#allocation4], 4294967280  ;;  %s1430_s30 = sshll.u32 %s1864_s29, 1  ;;  %vm462_vm0 = vcmask 261120   ;;  %s2165_s0 = sld [smem:[#allocation10_spill]]  ;;  %v1757_v4 = vmov 32.0  }
  0x1a   : > { %p451_p13 = scmp.lt.s32.totalorder %s1430_s30, 3  ;;  %1608 = vrcp.f32 %v1757_v4  ;;  %v1519_v21 = vld [vmem:[%s2147_s3 + $0x8] sm:$0xff]  ;;  %v1518_v23 = vld [vmem:[%s2147_s3] sm:$0xff]  ;;  %s1759_s17 = smov 64   ;;  %vm566_vm8 = vcmask 64512   ;;  %vm604_vm9 = vcmask 1043456  }
  0x1b   : > { %554 = vmatpush.bf16.msra.mxu0 %v1519_v21  ;;  %v1600_v42 = vld [vmem:[#allocation3] ss:$0 sm:$0xff]  ;;  %v1601_v47 = vld [vmem:[%s2146_s2] ss:$0 sm:$0xff]  ;;  %s1760_s21 = smov 96   ;;  %s1761_s22 = smov 120  }
  0x1c   : > { %s2173_s30 = smov (!%p451_p13, %s1430_s30), 3  ;;  %v1602_v52 = vld [vmem:[%s2148_s4] ss:$0 sm:$0xff]  ;;  %s1762_s23 = smov 104   ;;  %vm622_vm10 = vcmask 60416   ;;  %vm686_vm11 = vcmask 126016  }
  0x1d   : > { %s1431_s15 = sshll.u32 %s2173_s30, 3  ;;  %s1763_s24 = smov 112   ;;  %vm750_vm12 = vcmask 191616   ;;  %vm814_vm13 = vcmask 257216  }
  0x1e   : > { %s1764_s30 = smov 80   ;;  %s1766_s16 = smov 48  }
  0x1f   : > { %s454_s20 = scalar_lea.vmem %s2165_s0, %s1431_s15  ;;  %555 = vmatpush.bf16.msra.mxu0 %v1518_v23  ;;  %s1765_s15 = smov 72  }
  0x20   : > { %v1899_v0 = vld [vmem:[%s454_s20] sm:$0xff]  ;;  %v1903_v2 = vld [vmem:[%s454_s20 + $0x8] sm:$0xff]  ;;  %v1609_v5 = vpop.eup %1608  ;;  %s1758_s20 = smov 88  }
  0x21   : > { %v463_v1 = vsel %vm462_vm0, %v1899_v0, 0.0  ;;  %v466_v3 = vsel %vm462_vm0, %v1903_v2, 0.0  ;;  %v470_v6 = vmul.f32 32.0, %v1609_v5  ;;  %vm474_vm1 = vweird.f32 %v1609_v5 }
  0x22   : > { %464 = vadd.xlane.f32.xlu0 %v463_v1 }
  0x23   : > { %v471_v7 = vsub.f32 1.0, %v470_v6 }
  0x25   : > { %v472_v8 = vmul.f32 %v1609_v5, %v471_v7 }
  0x27   : > { %v473_v9 = vadd.f32 %v1609_v5, %v472_v8 }
  0x29   : > { %v1907_v10 = vsel %vm474_vm1, %v1609_v5, %v473_v9 }
  0x2a   : > { %467 = vadd.xlane.f32.xlu0 %v466_v3 }
  0x95   : > { %v465_v11 = vpop.xlane.xlu0 %464 }
  0x96   : > { %v476_v12 = vmul.f32 %v1907_v10, %v465_v11 }
  0x98   : > { %v478_v13 = vsub.f32 %v1899_v0, %v476_v12 }
  0x9a   : > { %v480_v14 = vmul.f32 %v478_v13, %v478_v13 }
  0x9c   : > { %v482_v15 = vsel %vm462_vm0, %v480_v14, 0.0 }
  0x9d   : > { %483 = vadd.xlane.f32.xlu1 %v482_v15  ;;  %v468_v16 = vpop.xlane.xlu0 %467 }
  0x9e   : > { %v477_v17 = vmul.f32 %v1907_v10, %v468_v16 }
  0xa0   : > { %v479_v18 = vsub.f32 %v1903_v2, %v477_v17 }
  0xa2   : > { %v481_v19 = vmul.f32 %v479_v18, %v479_v18 }
  0xa4   : > { %v485_v20 = vsel %vm462_vm0, %v481_v19, 0.0 }
  0xa5   : > { %486 = vadd.xlane.f32.xlu1 %v485_v20 }
 0x110   : > { %v484_v22 = vpop.xlane.xlu1 %483 }
 0x111   : > { %v488_v24 = vmul.f32 %v484_v22, %v1907_v10 }
 0x113   : > { %v490_v25 = vadd.f32 1e-05, %v488_v24 }
 0x115   : > { %1610 = vrsqrt.f32 %v490_v25  ;;  %vm498_vm3 = vweird.f32 %v490_v25 }
 0x118   : > { %v487_v26 = vpop.xlane.xlu1 %486 }
 0x119   : > { %v489_v27 = vmul.f32 %v487_v26, %v1907_v10 }
 0x11b   : > { %v1611_v28 = vpop.eup %1610  ;;  %v491_v29 = vadd.f32 1e-05, %v489_v27 }
 0x11c   : > { %v493_v30 = vmul.f32 %v1611_v28, %v490_v25  ;;  %vm499_vm2 = vweird.f32 %v1611_v28 }
 0x11d   : > { %1612 = vrsqrt.f32 %v491_v29  ;;  %vm500_vm4 = vmor %vm498_vm3, %vm499_vm2  ;;  %vm508_vm6 = vweird.f32 %v491_v29 }
 0x11e   : > { %v494_v31 = vmul.f32 %v1611_v28, %v493_v30 }
 0x120   : > { %v495_v32 = vmul.f32 0.5, %v494_v31 }
 0x122   : > { %v496_v33 = vsub.f32 1.5, %v495_v32 }
 0x123   : > { %v1613_v34 = vpop.eup %1612 }
 0x124   : > { %v497_v35 = vmul.f32 %v1611_v28, %v496_v33  ;;  %v503_v36 = vmul.f32 %v1613_v34, %v491_v29  ;;  %vm509_vm5 = vweird.f32 %v1613_v34 }
 0x125   : > { %vm510_vm7 = vmor %vm508_vm6, %vm509_vm5 }
 0x126   : > { %v504_v37 = vmul.f32 %v1613_v34, %v503_v36  ;;  %v501_v38 = vsel %vm500_vm4, %v1611_v28, %v497_v35 }
 0x127   : > { %v512_v41 = vmul.f32 %v501_v38, %v478_v13 }
 0x128   : > { %v505_v39 = vmul.f32 0.5, %v504_v37 }
 0x129   : > { %v517_v46 = vmul.f32 %v1600_v42, %v512_v41 }
 0x12a   : > { %v506_v40 = vsub.f32 1.5, %v505_v39 }
 0x12b   : > { %v522_v49 = vadd.f32 %v1601_v47, %v517_v46 }
 0x12c   : > { %v507_v43 = vmul.f32 %v1613_v34, %v506_v40 }
 0x12e   : > { %v511_v44 = vsel %vm510_vm7, %v1613_v34, %v507_v43 }
 0x12f   : > { %v513_v45 = vmul.f32 %v511_v44, %v479_v18 }
 0x131   : > { %v518_v48 = vmul.f32 %v1600_v42, %v513_v45 }
 0x133   : > { %v523_v50 = vadd.f32 %v1601_v47, %v518_v48 }
 0x135   : > { %v524_v51 = vpack.c.bf16 %v523_v50, %v522_v49 }
 0x137   : > { %1440 = vmatmul.msk.bf16.vlgmr.msra.gmra.mxu0 %vm462_vm0, %v524_v51 }
 0x1b4   : > { %v557_v53 = vpop.f32.mrf.mxu0 }
 0x1b5   : > { %v558_v54 = vadd.f32 %v1602_v52, %v557_v53 }
 0x1b7   : > { %v1930_v55 = vpack.c.bf16 %v558_v54, %v558_v54 }
 0x1b9   : > { %626 = vrot.lane.b32.xlu0 %v1930_v55, %s1758_s20  ;;  %599 = vrot.lane.b32.xlu1 %v1930_v55, %s1759_s17 }
 0x1ba   : > { %564 = vrot.lane.b32.xlu2 %v1930_v55, %s1760_s21 }
 0x1bc   : > { %v559_v56 = vpop.f32.mrf.mxu0 }
 0x1bd   : > { %v560_v57 = vadd.f32 %v1602_v52, %v559_v56 }
 0x1bf   : > { %v1942_v58 = vpack.c.bf16 %v560_v57, %v560_v57 }
 0x1c1   : > { %624 = vrot.lane.b32.xlu1 %v1930_v55, %s1761_s22 }
 0x1c9   : > { %752 = vrot.lane.b32.xlu1 %v1930_v55, %s1762_s23 }
 0x1d1   : > { %688 = vrot.lane.b32.xlu1 %v1930_v55, %s1763_s24 }
 0x1d9   : > { %818 = vrot.lane.b32.xlu1 %v1942_v58, %s1760_s21  ;;  %s2158_s21 = smov 8  }
 0x1e1   : > { %1001 = vrot.lane.b32.xlu1 %v1942_v58, %s1762_s23  ;;  %s1771_s23 = smov 24  }
 0x214   : > { %v565_v59 = vpop.permute.xlu2 %564 }
 0x215   : > { %v571_v60 = vsel %vm566_vm8, %v565_v59, 0 }
 0x216   : > { %580 = vmatpush.bf16.xpose.msra.mxu1 %v571_v60 }
 0x21d   : > { %1441 = vmatmul.msk.bf16.vlgmr.msra.gmra.mxu1 %vm566_vm8, %v1930_v55 }
 0x22b   : > { %v627_v61 = vpop.permute.xlu0 %626  ;;  %v600_v62 = vpop.permute.xlu1 %599 }
 0x22c   : > { %v606_v63 = vsel %vm604_vm9, %v600_v62, 0  ;;  %v632_v1 = vsel %vm566_vm8, %v627_v61, 0 }
 0x22d   : > { %615 = vmatpush.bf16.msra.mxu2 %v606_v63 }
 0x231   : > { %641 = vmatpush.bf16.xpose.msrb.mxu2 %v632_v1 }
 0x233   : > { %v625_v7 = vpop.permute.xlu1 %624 }
 0x23b   : > { %v753_v8 = vpop.permute.xlu1 %752 }
 0x243   : > { %v689_v9 = vpop.permute.xlu1 %688 }
 0x24b   : > { %v819_v14 = vpop.permute.xlu1 %818 }
 0x24c   : > { %v824_v17 = vsel %vm566_vm8, %v819_v14, 0 }
 0x253   : > { %v1002_v40 = vpop.permute.xlu1 %1001 }
 0x29a   : > { %v582_v3 = vpop.f32.mrf.mxu1 }
 0x29b   : > { %v586_v4 = vmul.f32 0.35355338, %v582_v3 }
 0x29d   : > { %v587_v5 = vsel %vm566_vm8, %v586_v4, -inf }
 0x29e   : > { %588 = vmax.xlane.f32.xlu2 %v587_v5 }
 0x2a2   : > { %v584_v6 = vpop.f32.mrf.mxu1 }
 0x2b6   : > { %690 = vrot.lane.b32.xlu2 %v1930_v55, %s1764_s30 }
 0x2be   : > { %940 = vrot.lane.b32.xlu2 %v1942_v58, %s1764_s30 }
 0x311   : > { %v589_v11 = vpop.xlane.xlu2 %588 }
 0x312   : > { %v590_v12 = vsub.f32 %v586_v4, %v589_v11 }
 0x314   : > { %v591_v13 = vmul.f32 1.442695, %v590_v12 }
 0x316   : > { %1614 = vpow2.f32 %v591_v13 }
 0x319   : > { %v691_v15 = vpop.permute.xlu2 %690 }
 0x31a   : > { %v696_v16 = vsel %vm566_vm8, %v691_v15, 0 }
 0x31b   : > { %705 = vmatpush.bf16.xpose.msrb.mxu0 %v696_v16 }
 0x31c   : > { %v1615_v18 = vpop.eup %1614 }
 0x31d   : > { %v593_v19 = vsel %vm566_vm8, %v1615_v18, 0.0 }
 0x31e   : > { %594 = vadd.xlane.f32.xlu0 %v593_v19 }
 0x321   : > { %v941_v20 = vpop.permute.xlu2 %940 }
 0x322   : > { %v946_v21 = vsel %vm566_vm8, %v941_v20, 0  ;;  %1445 = vmatmul.msk.bf16.vlgmr.msrb.gmra.mxu0 %vm566_vm8, %v689_v9 }
 0x323   : > { %833 = vmatpush.bf16.xpose.msra.mxu0 %v824_v17 }
 0x32b   : > { %955 = vmatpush.bf16.xpose.msrb.mxu0 %v946_v21 }
 0x332   : > { %754 = vrot.lane.b32.xlu0 %v1930_v55, %s1765_s15  ;;  %1449 = vmatmul.msk.bf16.vlgmr.msra.gmra.mxu0 %vm566_vm8, %v1942_v58 }
 0x33a   : > { %877 = vrot.lane.b32.xlu0 %v1942_v58, %s1758_s20  ;;  %s1767_s20 = smov 56  }
 0x342   : > { %875 = vrot.lane.b32.xlu0 %v1942_v58, %s1761_s22  ;;  %s1770_s22 = smov 16  }
 0x34a   : > { %1003 = vrot.lane.b32.xlu0 %v1942_v58, %s1765_s15  ;;  %s1708_s15 = scalar_lea.hbm %s2157_s13, 32 }
 0x352   : > { %938 = vrot.lane.b32.xlu0 %v1942_v58, %s1763_s24  ;;  %s1533_s24 = sshll.u32 %s1864_s29, 4 }
 0x353   : > { %s1345_s0 = scalar_lea.hbm %s2157_s13, %s1533_s24 }
 0x354   : > { %s1348_s1 = sshll.u32 %s1345_s0, 4  ;;  %s1349_s1 = int_to_ptr.hbm [resolvable:$true] %s1348_s1 }
 0x391   : > { %v595_v22 = vpop.xlane.xlu0 %594 }
 0x392   : > { %1616 = vrcp.f32 %v595_v22 }
 0x398   : > { %v1617_v23 = vpop.eup %1616 }
 0x399   : > { %v597_v24 = vmul.f32 %v1617_v23, %v1615_v18 }
 0x39b   : > { %v598_v25 = vpack.c.bf16 %v597_v24, %v597_v24 }
 0x39d   : > { %1442 = vmatmul.msk.bf16.vlgmr.msra.gmra.mxu2 %vm566_vm8, %v598_v25 }
 0x39f   : > { %v707_v26 = vpop.f32.mrf.mxu0 }
 0x3a0   : > { %v711_v27 = vmul.f32 0.35355338, %v707_v26 }
 0x3a2   : > { %v712_v28 = vsel %vm566_vm8, %v711_v27, -inf }
 0x3a3   : > { %713 = vmax.xlane.f32.xlu0 %v712_v28 }
 0x3a4   : > { %v755_v29 = vpop.permute.xlu0 %754 }
 0x3a5   : > { %v760_v30 = vsel %vm566_vm8, %v755_v29, 0 }
 0x3a6   : > { %769 = vmatpush.bf16.xpose.msra.mxu3 %v760_v30 }
 0x3a7   : > { %v709_v31 = vpop.f32.mrf.mxu0 }
 0x3ac   : > { %v878_v32 = vpop.permute.xlu0 %877 }
 0x3ad   : > { %1443 = vmatmul.msk.bf16.vlgmr.msrb.gmra.mxu2 %vm566_vm8, %v625_v7  ;;  %1447 = vmatmul.msk.bf16.vlgmr.msra.gmra.mxu3 %vm566_vm8, %v753_v8  ;;  %v883_v33 = vsel %vm566_vm8, %v878_v32, 0 }
 0x3ae   : > { %892 = vmatpush.bf16.xpose.msrb.mxu3 %v883_v33 }
 0x3af   : > { %v835_v34 = vpop.f32.mrf.mxu0 }
 0x3b0   : > { %v1982_v50 = vmul.f32 0.35355338, %v835_v34 }
 0x3b2   : > { %v840_v54 = vsel %vm566_vm8, %v1982_v50, -inf }
 0x3b4   : > { %v876_v35 = vpop.permute.xlu0 %875 }
 0x3b7   : > { %v837_v36 = vpop.f32.mrf.mxu0 }
 0x3bc   : > { %v1004_v37 = vpop.permute.xlu0 %1003 }
 0x3bd   : > { %v1009_v38 = vsel %vm566_vm8, %v1004_v37, 0  ;;  %1451 = vmatmul.msk.bf16.vlgmr.msrb.gmra.mxu3 %vm566_vm8, %v876_v35 }
 0x3be   : > { %1018 = vmatpush.bf16.xpose.msra.mxu3 %v1009_v38 }
 0x3c4   : > { %v939_v39 = vpop.permute.xlu0 %938 }
 0x3c5   : > { %1453 = vmatmul.msk.bf16.vlgmr.msrb.gmra.mxu0 %vm566_vm8, %v939_v39 }
 0x3cd   : > { %1455 = vmatmul.msk.bf16.vlgmr.msra.gmra.mxu3 %vm566_vm8, %v1002_v40 }
 0x416   : > { %v714_v53 = vpop.xlane.xlu0 %713 }
 0x417   : > { %v715_v56 = vsub.f32 %v711_v27, %v714_v53 }
 0x419   : > { %v716_v57 = vmul.f32 1.442695, %v715_v56 }
 0x41b   : > { %1618 = vpow2.f32 %v716_v57 }
 0x420   : > { %v617_v41 = vpop.f32.mrf.mxu2 }
 0x421   : > { %v621_v42 = vpack.c.bf16 %v617_v41, %v617_v41  ;;  %v1619_v4 = vpop.eup %1618 }
 0x422   : > { %v718_v6 = vsel %vm566_vm8, %v1619_v4, 0.0 }
 0x423   : > { %623 = vst.msk [vmem:[#allocation2] sm:$0xf] %vm622_vm10, %v621_v42 }
 0x428   : > { %v619_v43 = vpop.f32.mrf.mxu2 }
 0x430   : > { %v643_v44 = vpop.f32.mrf.mxu2  ;;  %v771_v45 = vpop.f32.mrf.mxu3 }
 0x431   : > { %v647_v46 = vmul.f32 0.35355338, %v643_v44  ;;  %v775_v47 = vmul.f32 0.35355338, %v771_v45 }
 0x433   : > { %v648_v48 = vsel %vm566_vm8, %v647_v46, -inf  ;;  %v776_v49 = vsel %vm566_vm8, %v775_v47, -inf }
 0x434   : > { %649 = vmax.xlane.f32.xlu1 %v648_v48  ;;  %777 = vmax.xlane.f32.xlu2 %v776_v49 }
 0x438   : > { %v645_v51 = vpop.f32.mrf.mxu2  ;;  %v773_v52 = vpop.f32.mrf.mxu3 }
 0x43c   : > { %841 = vmax.xlane.f32.xlu1 %v840_v54 }
 0x440   : > { %v894_v59 = vpop.f32.mrf.mxu3 }
 0x441   : > { %v898_v60 = vmul.f32 0.35355338, %v894_v59 }
 0x442   : > { %v957_v61 = vpop.f32.mrf.mxu0 }
 0x443   : > { %v961_v62 = vmul.f32 0.35355338, %v957_v61  ;;  %v899_v63 = vsel %vm566_vm8, %v898_v60, -inf }
 0x444   : > { %900 = vmax.xlane.f32.xlu2 %v899_v63 }
 0x445   : > { %v962_v1 = vsel %vm566_vm8, %v961_v62, -inf }
 0x446   : > { %963 = vmax.xlane.f32.xlu1 %v962_v1 }
 0x448   : > { %v896_v3 = vpop.f32.mrf.mxu3 }
 0x44a   : > { %v959_v5 = vpop.f32.mrf.mxu0 }
 0x44e   : > { %719 = vadd.xlane.f32.xlu1 %v718_v6 }
 0x450   : > { %v1020_v7 = vpop.f32.mrf.mxu3 }
 0x451   : > { %v1024_v8 = vmul.f32 0.35355338, %v1020_v7 }
 0x453   : > { %v1025_v9 = vsel %vm566_vm8, %v1024_v8, -inf }
 0x454   : > { %1026 = vmax.xlane.f32.xlu0 %v1025_v9 }
 0x458   : > { %v1022_v11 = vpop.f32.mrf.mxu3 }
 0x467   : > { %724 = vrot.lane.b32.xlu1 %v1930_v55, %s1766_s16 }
 0x468   : > { %660 = vrot.lane.b32.xlu0 %v1930_v55, %s1767_s20 }
 0x46f   : > { %911 = vrot.lane.b32.xlu1 %v1942_v58, %s1767_s20  ;;  %s447_s20 = sand.u32 1, %s1746_s26  }
 0x470   : > { %s1334_s29 = scalar_lea.sflag [#allocation5], %s447_s20 }
 0x477   : > { %852 = vrot.lane.b32.xlu1 %v1942_v58, %s1759_s17  ;;  %s1768_s17 = smov 40  }
 0x4a7   : > { %v650_v12 = vpop.xlane.xlu1 %649  ;;  %v778_v13 = vpop.xlane.xlu2 %777 }
 0x4a8   : > { %v779_v14 = vsub.f32 %v775_v47, %v778_v13  ;;  %v651_v16 = vsub.f32 %v647_v46, %v650_v12 }
 0x4aa   : > { %v780_v15 = vmul.f32 1.442695, %v779_v14  ;;  %v652_v17 = vmul.f32 1.442695, %v651_v16 }
 0x4ac   : > { %1620 = vpow2.f32 %v780_v15 }
 0x4ad   : > { %1622 = vpow2.f32 %v652_v17 }
 0x4af   : > { %v842_v18 = vpop.xlane.xlu1 %841 }
 0x4b2   : > { %v1996_v19 = vpop.eup %1620 }
 0x4b3   : > { %v782_v20 = vsel %vm566_vm8, %v1996_v19, 0.0  ;;  %v1623_v23 = vpop.eup %1622 }
 0x4b4   : > { %783 = vadd.xlane.f32.xlu2 %v782_v20  ;;  %v654_v27 = vsel %vm566_vm8, %v1623_v23, 0.0 }
 0x4b7   : > { %v901_v21 = vpop.xlane.xlu2 %900 }
 0x4b8   : > { %v902_v22 = vsub.f32 %v898_v60, %v901_v21 }
 0x4b9   : > { %v964_v24 = vpop.xlane.xlu1 %963 }
 0x4ba   : > { %v903_v25 = vmul.f32 1.442695, %v902_v22  ;;  %v965_v26 = vsub.f32 %v961_v62, %v964_v24 }
 0x4bc   : > { %1624 = vpow2.f32 %v903_v25  ;;  %655 = vadd.xlane.f32.xlu2 %v654_v27  ;;  %v966_v28 = vmul.f32 1.442695, %v965_v26 }
 0x4be   : > { %1626 = vpow2.f32 %v966_v28 }
 0x4c1   : > { %v720_v36 = vpop.xlane.xlu1 %719 }
 0x4c2   : > { %v2001_v29 = vpop.eup %1624 }
 0x4c3   : > { %v905_v30 = vsel %vm566_vm8, %v2001_v29, 0.0 }
 0x4c4   : > { %906 = vadd.xlane.f32.xlu0 %v905_v30  ;;  %v2005_v32 = vpop.eup %1626 }
 0x4c5   : > { %v968_v35 = vsel %vm566_vm8, %v2005_v32, 0.0 }
 0x4c7   : > { %v1027_v31 = vpop.xlane.xlu0 %1026 }
 0x4c8   : > { %v1028_v33 = vsub.f32 %v1024_v8, %v1027_v31 }
 0x4ca   : > { %v1029_v34 = vmul.f32 1.442695, %v1028_v33 }
 0x4cc   : > { %1628 = vpow2.f32 %v1029_v34  ;;  %969 = vadd.xlane.f32.xlu0 %v968_v35 }
 0x4cd   : > { %1630 = vrcp.f32 %v720_v36 }
 0x4d2   : > { %v1629_v37 = vpop.eup %1628 }
 0x4d3   : > { %v1031_v38 = vsel %vm566_vm8, %v1629_v37, 0.0  ;;  %v1631_v39 = vpop.eup %1630 }
 0x4d4   : > { %1032 = vadd.xlane.f32.xlu1 %v1031_v38  ;;  %788 = vrot.lane.b32.xlu2 %v1930_v55, %s1768_s17  ;;  %v722_v40 = vmul.f32 %v1631_v39, %v1619_v4  ;;  %v843_v55 = vsub.f32 %v1982_v50, %v842_v18 }
 0x4d6   : > { %v723_v45 = vpack.c.bf16 %v722_v40, %v722_v40  ;;  %v844_v49 = vmul.f32 1.442695, %v843_v55 }
 0x4d8   : > { %1632 = vpow2.f32 %v844_v49 }
 0x4d9   : > { %v725_v41 = vpop.permute.xlu1 %724 }
 0x4da   : > { %v661_v42 = vpop.permute.xlu0 %660  ;;  %v730_v43 = vsel %vm604_vm9, %v725_v41, 0 }
 0x4db   : > { %v666_v44 = vsel %vm604_vm9, %v661_v42, 0  ;;  %739 = vmatpush.bf16.msrb.mxu1 %v730_v43 }
 0x4dc   : > { %675 = vmatpush.bf16.msra.mxu2 %v666_v44 }
 0x4de   : > { %1446 = vmatmul.msk.bf16.vlgmr.msrb.gmra.mxu1 %vm566_vm8, %v723_v45  ;;  %v1633_v51 = vpop.eup %1632 }
 0x4df   : > { %v846_v52 = vsel %vm566_vm8, %v1633_v51, 0.0 }
 0x4e0   : > { %1037 = vrot.lane.b32.xlu0 %v1942_v58, %s1768_s17  ;;  %s1702_s17 = sshra.s32 %s1349_s1, 4  ;;  %s1703_s17 = int_to_ptr.hbm [resolvable:$true] %s1702_s17 }
 0x4e1   : > { %v912_v46 = vpop.permute.xlu1 %911  ;;  %p1709_p3 = scmp.lt.s32.totalorder %s1703_s17, %s2157_s13 }
 0x4e2   : > { %v917_v50 = vsel %vm604_vm9, %v912_v46, 0 }
 0x4e9   : > { %v853_v47 = vpop.permute.xlu1 %852 }
 0x4ea   : > { %v858_v48 = vsel %vm604_vm9, %v853_v47, 0  ;;  %v1522_v47 = vld [vmem:[%s2149_s5 + $0x8] sm:$0xff] }
 0x4eb   : > { %867 = vmatpush.bf16.msra.mxu1 %v858_v48  ;;  %1100 = vmatpush.bf16.msra.mxu0 %v1522_v47  ;;  %v1521_v48 = vld [vmem:[%s2149_s5] sm:$0xff]  ;;  %v1527_v47 = vld [vmem:[%s2155_s11 + $0x10] sm:$0xff] }
 0x4ef   : > { %1101 = vmatpush.bf16.msra.mxu0 %v1521_v48 }
 0x4fd   : > { %847 = vadd.xlane.f32.xlu2 %v846_v52 }
 0x515   : > { %974 = vrot.lane.b32.xlu2 %v1942_v58, %s1766_s16 }
 0x527   : > { %v784_v53 = vpop.xlane.xlu2 %783 }
 0x52f   : > { %v656_v54 = vpop.xlane.xlu2 %655 }
 0x530   : > { %1634 = vrcp.f32 %v656_v54 }
 0x531   : > { %1636 = vrcp.f32 %v784_v53  ;;  %v1603_v53 = vld [vmem:[%s2150_s6] ss:$0 sm:$0xff] }
 0x536   : > { %v1635_v56 = vpop.eup %1634 }
 0x537   : > { %v658_v57 = vmul.f32 %v1635_v56, %v1623_v23  ;;  %v789_v59 = vpop.permute.xlu2 %788  ;;  %v907_v62 = vpop.xlane.xlu0 %906 }
 0x538   : > { %v794_v60 = vsel %vm604_vm9, %v789_v59, 0  ;;  %v1637_v63 = vpop.eup %1636  ;;  %1638 = vrcp.f32 %v907_v62 }
 0x539   : > { %v659_v61 = vpack.c.bf16 %v658_v57, %v658_v57  ;;  %803 = vmatpush.bf16.msrb.mxu2 %v794_v60  ;;  %v786_v58 = vmul.f32 %v1637_v63, %v1996_v19 }
 0x53b   : > { %1444 = vmatmul.msk.bf16.vlgmr.msra.gmra.mxu2 %vm566_vm8, %v659_v61  ;;  %v787_v1 = vpack.c.bf16 %v786_v58, %v786_v58 }
 0x53d   : > { %926 = vmatpush.bf16.msra.mxu2 %v917_v50 }
 0x53e   : > { %v1639_v5 = vpop.eup %1638 }
 0x53f   : > { %v970_v3 = vpop.xlane.xlu0 %969  ;;  %v909_v7 = vmul.f32 %v1639_v5, %v2001_v29 }
 0x541   : > { %v910_v8 = vpack.c.bf16 %v909_v7, %v909_v7 }
 0x547   : > { %v1033_v9 = vpop.xlane.xlu1 %1032 }
 0x548   : > { %1640 = vrcp.f32 %v1033_v9 }
 0x54b   : > { %1448 = vmatmul.msk.bf16.vlgmr.msrb.gmra.mxu2 %vm566_vm8, %v787_v1 }
 0x54e   : > { %v1641_v12 = vpop.eup %1640 }
 0x54f   : > { %v1035_v14 = vmul.f32 %v1641_v12, %v1629_v37 }
 0x551   : > { %v1036_v15 = vpack.c.bf16 %v1035_v14, %v1035_v14 }
 0x552   : > { %v1038_v4 = vpop.permute.xlu0 %1037 }
 0x553   : > { %v1043_v6 = vsel %vm604_vm9, %v1038_v4, 0 }
 0x554   : > { %1052 = vmatpush.bf16.msrb.mxu2 %v1043_v6 }
 0x55b   : > { %v741_v11 = vpop.f32.mrf.mxu1  ;;  %1452 = vmatmul.msk.bf16.vlgmr.msra.gmra.mxu2 %vm566_vm8, %v910_v8  ;;  %v1524_v8 = vld [vmem:[%s2153_s9 + $0x8] sm:$0xff] }
 0x55c   : > { %v745_v28 = vpack.c.bf16 %v741_v11, %v741_v11 }
 0x563   : > { %v743_v13 = vpop.f32.mrf.mxu1 }
 0x564   : > { %v1523_v13 = vld [vmem:[%s2153_s9] sm:$0xff] }
 0x56b   : > { %1456 = vmatmul.msk.bf16.vlgmr.msrb.gmra.mxu2 %vm566_vm8, %v1036_v15 }
 0x570   : > { %v848_v16 = vpop.xlane.xlu2 %847 }
 0x571   : > { %1642 = vrcp.f32 %v848_v16 }
 0x572   : > { %1644 = vrcp.f32 %v970_v3 }
 0x577   : > { %v1643_v17 = vpop.eup %1642 }
 0x578   : > { %v850_v18 = vmul.f32 %v1643_v17, %v1633_v51  ;;  %v975_v19 = vpop.permute.xlu2 %974  ;;  %v1645_v22 = vpop.eup %1644 }
 0x579   : > { %v980_v20 = vsel %vm604_vm9, %v975_v19, 0  ;;  %v972_v23 = vmul.f32 %v1645_v22, %v2005_v32 }
 0x57a   : > { %v851_v21 = vpack.c.bf16 %v850_v18, %v850_v18  ;;  %989 = vmatpush.bf16.msrb.mxu1 %v980_v20 }
 0x57b   : > { %v973_v24 = vpack.c.bf16 %v972_v23, %v972_v23 }
 0x57c   : > { %1450 = vmatmul.msk.bf16.vlgmr.msra.gmra.mxu1 %vm566_vm8, %v851_v21 }
 0x57e   : > { %1196 = vmatpush.bf16.msra.mxu1 %v1524_v8 }
 0x582   : > { %1197 = vmatpush.bf16.msra.mxu1 %v1523_v13 }
 0x58c   : > { %1454 = vmatmul.msk.bf16.vlgmr.msrb.gmra.mxu1 %vm566_vm8, %v973_v24 }
 0x5be   : > { %v677_v25 = vpop.f32.mrf.mxu2 }
 0x5bf   : > { %v681_v26 = vpack.c.bf16 %v677_v25, %v677_v25 }
 0x5c1   : > { %683 = vrot.lane.b32.xlu0 %v681_v26, %s2158_s21 }
 0x5c6   : > { %v679_v27 = vpop.f32.mrf.mxu2 }
 0x5c9   : > { %747 = vrot.lane.b32.xlu0 %v745_v28, %s1770_s22 }
 0x5ce   : > { %v805_v29 = vpop.f32.mrf.mxu2 }
 0x5cf   : > { %v809_v30 = vpack.c.bf16 %v805_v29, %v805_v29 }
 0x5d1   : > { %811 = vrot.lane.b32.xlu0 %v809_v30, %s1771_s23 }
 0x5d6   : > { %v807_v31 = vpop.f32.mrf.mxu2 }
 0x5de   : > { %v928_v33 = vpop.f32.mrf.mxu2 }
 0x5df   : > { %v932_v34 = vpack.c.bf16 %v928_v33, %v928_v33  ;;  %v1605_v33 = vld [vmem:[%s2152_s8] ss:$0 sm:$0xff] }
 0x5e1   : > { %934 = vrot.lane.b32.xlu1 %v932_v34, %s2158_s21 }
 0x5e6   : > { %v930_v32 = vpop.f32.mrf.mxu2 }
 0x5ee   : > { %v1054_v35 = vpop.f32.mrf.mxu2 }
 0x5ef   : > { %v1058_v43 = vpack.c.bf16 %v1054_v35, %v1054_v35 }
 0x5f6   : > { %v1056_v36 = vpop.f32.mrf.mxu2 }
 0x5f9   : > { %v869_v37 = vpop.f32.mrf.mxu1 }
 0x5fa   : > { %v873_v38 = vpack.c.bf16 %v869_v37, %v869_v37 }
 0x5fc   : > { %874 = vst.msk [vmem:[#allocation2 + $0x4] sm:$0xf] %vm622_vm10, %v873_v38 }
 0x601   : > { %v871_v39 = vpop.f32.mrf.mxu1 }
 0x602   : > { %v1532_v39 = vld [vmem:[%s2155_s11 + $0x38] sm:$0xff] }
 0x603   : > { %1315 = vmatpush.bf16.msrb.mxu3 %v1532_v39 }
 0x609   : > { %v991_v40 = vpop.f32.mrf.mxu1 }
 0x60a   : > { %v995_v41 = vpack.c.bf16 %v991_v40, %v991_v40  ;;  %v1531_v40 = vld [vmem:[%s2155_s11 + $0x30] sm:$0xff] }
 0x60b   : > { %1316 = vmatpush.bf16.msrb.mxu3 %v1531_v40 }
 0x60c   : > { %997 = vrot.lane.b32.xlu2 %v995_v41, %s1770_s22  ;;  %v1530_v41 = vld [vmem:[%s2155_s11 + $0x28] sm:$0xff]  ;;  %s1704_s22 = scalar_lea.hbm %s1703_s17, 16 }
 0x60d   : > { %p1705_p0 = scmp.ne.s32.totalorder %s1703_s17, %s1704_s22  ;;  %p1710_p4 = scmp.lt.s32.totalorder %s1708_s15, %s1704_s22 }
 0x60f   : > { %1317 = vmatpush.bf16.msrb.mxu3 %v1530_v41  ;;  %p1706_p1 = pnand %p1705_p0, %p1881_p5  ;;  %p1711_p7 = por %p1710_p4, %p1709_p3 }
 0x611   : > { %v993_v42 = vpop.f32.mrf.mxu1  ;;  %p1707_p2 = pneg %p1706_p1 }
 0x612   : > { %v1529_v42 = vld [vmem:[%s2155_s11 + $0x20] sm:$0xff] }
 0x613   : > { %1318 = vmatpush.bf16.msrb.mxu3 %v1529_v42  ;;  %p1712_p8 = pnand %p1711_p7, %p1707_p2 }
 0x614   : > { %1060 = vrot.lane.b32.xlu2 %v1058_v43, %s1771_s23  ;;  %v1606_v43 = vld [vmem:[%s2154_s10] ss:$0 sm:$0xff]  ;;  %s1429_s23 = sshll.u32 %s447_s20, 4 }
 0x615   : > { %s449_s30 = scalar_lea.vmem [#allocation6], %s1429_s23 }
 0x616   : > { %s1346_s21 = sshll.u32 %s449_s30, 4  ;;  %s1347_s21 = int_to_ptr.vmem [resolvable:$true] %s1346_s21 }
 0x633   : > { %v684_v44 = vpop.permute.xlu0 %683 }
 0x634   : > { %687 = vst.msk [vmem:[#allocation2] sm:$0xf] %vm686_vm11, %v684_v44  ;;  %v1528_v44 = vld [vmem:[%s2155_s11 + $0x18] sm:$0xff] }
 0x635   : > { %1319 = vmatpush.bf16.msrb.mxu3 %v1528_v44 }
 0x639   : > { %1320 = vmatpush.bf16.msrb.mxu3 %v1527_v47 }
 0x63b   : > { %v748_v45 = vpop.permute.xlu0 %747 }
 0x63c   : > { %751 = vst.msk [vmem:[#allocation2] sm:$0xf] %vm750_vm12, %v748_v45 }
 0x643   : > { %v812_v46 = vpop.permute.xlu0 %811 }
 0x644   : > { %815 = vst.msk [vmem:[#allocation2] sm:$0xf] %vm814_vm13, %v812_v46 }
 0x653   : > { %v935_v55 = vpop.permute.xlu1 %934 }
 0x654   : > { %937 = vst.msk [vmem:[#allocation2 + $0x4] sm:$0xf] %vm686_vm11, %v935_v55 }
 0x666   : > { %v998_v49 = vpop.permute.xlu2 %997 }
 0x667   : > { %1000 = vst.msk [vmem:[#allocation2 + $0x4] sm:$0xf] %vm750_vm12, %v998_v49  ;;  %v1526_v49 = vld [vmem:[%s2155_s11 + $0x8] sm:$0xff] }
 0x668   : > { %1321 = vmatpush.bf16.msrb.mxu3 %v1526_v49 }
 0x66e   : > { %v1061_v51 = vpop.permute.xlu2 %1060 }
 0x66f   : > { %1063 = vst.msk [vmem:[#allocation2 + $0x4] sm:$0xf] %vm814_vm13, %v1061_v51 }
 0x676   : > { %v1520_v52 = vld [vmem:[#allocation2] sm:$0xff] }
 0x677   : > { %1469 = vmatmul.msk.bf16.vlgmr.msra.gmra.mxu0 %vm462_vm0, %v1520_v52 }
 0x6f4   : > { %v1103_v54 = vpop.f32.mrf.mxu0 }
 0x6f5   : > { %v1104_v56 = vadd.f32 %v1603_v53, %v1103_v54 }
 0x6f7   : > { %v2047_v57 = vadd.f32 %v1104_v56, %v1899_v0 }
 0x6f9   : > { %v1112_v59 = vsel %vm462_vm0, %v2047_v57, 0.0 }
 0x6fa   : > { %1113 = vadd.xlane.f32.xlu0 %v1112_v59 }
 0x6fc   : > { %v1105_v60 = vpop.f32.mrf.mxu0 }
 0x6fd   : > { %v1106_v61 = vadd.f32 %v1603_v53, %v1105_v60  ;;  %v1525_v53 = vld [vmem:[%s2155_s11] sm:$0xff] }
 0x6fe   : > { %1322 = vmatpush.bf16.msrb.mxu3 %v1525_v53 }
 0x6ff   : > { %v2052_v50 = vadd.f32 %v1106_v61, %v1903_v2 }
 0x701   : > { %v1115_v62 = vsel %vm462_vm0, %v2052_v50, 0.0 }
 0x702   : > { %1116 = vadd.xlane.f32.xlu2 %v1115_v62 }
 0x76d   : > { %v1114_v63 = vpop.xlane.xlu0 %1113 }
 0x76e   : > { %v1118_v58 = vmul.f32 %v1114_v63, %v1907_v10 }
 0x770   : > { %v1120_v1 = vsub.f32 %v2047_v57, %v1118_v58 }
 0x772   : > { %v1122_v0 = vmul.f32 %v1120_v1, %v1120_v1 }
 0x774   : > { %v1124_v3 = vsel %vm462_vm0, %v1122_v0, 0.0 }
 0x775   : > { %v1117_v4 = vpop.xlane.xlu2 %1116  ;;  %1125 = vadd.xlane.f32.xlu1 %v1124_v3 }
 0x776   : > { %v1119_v5 = vmul.f32 %v1117_v4, %v1907_v10 }
 0x778   : > { %v1121_v6 = vsub.f32 %v2052_v50, %v1119_v5 }
 0x77a   : > { %v1123_v2 = vmul.f32 %v1121_v6, %v1121_v6 }
 0x77c   : > { %v1127_v7 = vsel %vm462_vm0, %v1123_v2, 0.0 }
 0x77d   : > { %1128 = vadd.xlane.f32.xlu0 %v1127_v7 }
 0x7e8   : > { %v1126_v9 = vpop.xlane.xlu1 %1125 }
 0x7e9   : > { %v1130_v11 = vmul.f32 %v1126_v9, %v1907_v10 }
 0x7eb   : > { %v1132_v12 = vadd.f32 1e-05, %v1130_v11 }
 0x7ed   : > { %1646 = vrsqrt.f32 %v1132_v12  ;;  %vm1140_vm15 = vweird.f32 %v1132_v12 }
 0x7f0   : > { %v1129_v14 = vpop.xlane.xlu0 %1128 }
 0x7f1   : > { %v1131_v15 = vmul.f32 %v1129_v14, %v1907_v10  ;;  %v1604_v10 = vld [vmem:[%s2151_s7] ss:$0 sm:$0xff] }
 0x7f3   : > { %v1647_v16 = vpop.eup %1646  ;;  %v1133_v17 = vadd.f32 1e-05, %v1131_v15 }
 0x7f4   : > { %v1135_v18 = vmul.f32 %v1647_v16, %v1132_v12  ;;  %vm1141_vm14 = vweird.f32 %v1647_v16 }
 0x7f5   : > { %1648 = vrsqrt.f32 %v1133_v17  ;;  %vm1142_vm1 = vmor %vm1140_vm15, %vm1141_vm14  ;;  %vm1150_vm3 = vweird.f32 %v1133_v17 }
 0x7f6   : > { %v1136_v19 = vmul.f32 %v1647_v16, %v1135_v18 }
 0x7f8   : > { %v1137_v20 = vmul.f32 0.5, %v1136_v19 }
 0x7fa   : > { %v1138_v21 = vsub.f32 1.5, %v1137_v20 }
 0x7fb   : > { %v1649_v22 = vpop.eup %1648 }
 0x7fc   : > { %v1139_v23 = vmul.f32 %v1647_v16, %v1138_v21  ;;  %v1145_v24 = vmul.f32 %v1649_v22, %v1133_v17  ;;  %vm1151_vm2 = vweird.f32 %v1649_v22 }
 0x7fd   : > { %vm1152_vm4 = vmor %vm1150_vm3, %vm1151_vm2 }
 0x7fe   : > { %v1146_v25 = vmul.f32 %v1649_v22, %v1145_v24  ;;  %v1143_v26 = vsel %vm1142_vm1, %v1647_v16, %v1139_v23 }
 0x7ff   : > { %v1154_v29 = vmul.f32 %v1143_v26, %v1120_v1 }
 0x800   : > { %v1147_v27 = vmul.f32 0.5, %v1146_v25 }
 0x801   : > { %v1159_v34 = vmul.f32 %v1604_v10, %v1154_v29 }
 0x802   : > { %v1148_v28 = vsub.f32 1.5, %v1147_v27 }
 0x803   : > { %v1164_v36 = vadd.f32 %v1605_v33, %v1159_v34 }
 0x804   : > { %v1149_v30 = vmul.f32 %v1649_v22, %v1148_v28 }
 0x806   : > { %v1153_v31 = vsel %vm1152_vm4, %v1649_v22, %v1149_v30  ;;  %v1607_v22 = vld [vmem:[%s2156_s12] ss:$0 sm:$0xff] }
 0x807   : > { %v1155_v32 = vmul.f32 %v1153_v31, %v1121_v6 }
 0x809   : > { %v1160_v35 = vmul.f32 %v1604_v10, %v1155_v32 }
 0x80b   : > { %v1165_v37 = vadd.f32 %v1605_v33, %v1160_v35 }
 0x80d   : > { %v1166_v38 = vpack.c.bf16 %v1165_v37, %v1164_v36 }
 0x80f   : > { %1478 = vmatmul.msk.bf16.vlgmr.msra.gmra.mxu1 %vm462_vm0, %v1166_v38 }
 0x88c   : > { %v1199_v45 = vpop.f32.mrf.mxu1 }
 0x88d   : > { %v1200_v46 = vadd.f32 %v1606_v43, %v1199_v45 }
 0x88f   : > { %v1479_v48 = vmul.f32 -1.702, %v1200_v46 }
 0x891   : > { %v1208_v55 = vmul.f32 1.442695, %v1479_v48 }
 0x893   : > { %1650 = vpow2.f32 %v1208_v55 }
 0x894   : > { %v1201_v51 = vpop.f32.mrf.mxu1 }
 0x895   : > { %v1202_v52 = vadd.f32 %v1606_v43, %v1201_v51 }
 0x897   : > { %v1480_v54 = vmul.f32 -1.702, %v1202_v52 }
 0x899   : > { %v1651_v56 = vpop.eup %1650  ;;  %v1210_v59 = vmul.f32 1.442695, %v1480_v54 }
 0x89a   : > { %v1212_v60 = vadd.f32 1.0, %v1651_v56 }
 0x89b   : > { %1652 = vpow2.f32 %v1210_v59 }
 0x89c   : > { %1654 = vrcp.f32 %v1212_v60  ;;  %v1225_v6 = vand.u32 2147483648, %v1212_v60  ;;  %vm1219_vm6 = vweird.f32 %v1212_v60  ;;  %v1223_v2 = vand.u32 2147483647, %v1212_v60 }
 0x89e   : > { %v1226_v13 = vor.u32 1.1754944e-38, %v1225_v6  ;;  %vm1224_vm9 = vcmp.eq.f32.partialorder %v1223_v2, 8.507059e+37 }
 0x8a1   : > { %v1653_v61 = vpop.eup %1652 }
 0x8a2   : > { %v1655_v62 = vpop.eup %1654  ;;  %v1213_v63 = vadd.f32 1.0, %v1653_v61 }
 0x8a3   : > { %v1215_v58 = vmul.f32 %v1655_v62, %v1212_v60  ;;  %vm1220_vm5 = vweird.f32 %v1655_v62 }
 0x8a4   : > { %1656 = vrcp.f32 %v1213_v63  ;;  %vm1221_vm7 = vmor %vm1219_vm6, %vm1220_vm5  ;;  %v1240_v8 = vand.u32 2147483648, %v1213_v63  ;;  %v1238_v12 = vand.u32 2147483647, %v1213_v63  ;;  %vm1234_vm10 = vweird.f32 %v1213_v63 }
 0x8a5   : > { %v1216_v1 = vsub.f32 1.0, %v1215_v58 }
 0x8a6   : > { %v1241_v16 = vor.u32 1.1754944e-38, %v1240_v8  ;;  %vm1239_vm12 = vcmp.eq.f32.partialorder %v1238_v12, 8.507059e+37 }
 0x8a7   : > { %v1217_v0 = vmul.f32 %v1655_v62, %v1216_v1 }
 0x8a9   : > { %v1218_v4 = vadd.f32 %v1655_v62, %v1217_v0 }
 0x8aa   : > { %v1657_v3 = vpop.eup %1656 }
 0x8ab   : > { %v1230_v5 = vmul.f32 %v1657_v3, %v1213_v63  ;;  %v1222_v9 = vsel %vm1221_vm7, %v1655_v62, %v1218_v4  ;;  %vm1235_vm8 = vweird.f32 %v1657_v3 }
 0x8ac   : > { %v1227_v15 = vsel %vm1224_vm9, %v1226_v13, %v1222_v9  ;;  %vm1236_vm11 = vmor %vm1234_vm10, %vm1235_vm8 }
 0x8ad   : > { %v1231_v7 = vsub.f32 1.0, %v1230_v5  ;;  %v1244_v19 = vmul.f32 %v1227_v15, %v1200_v46 }
 0x8af   : > { %v1232_v11 = vmul.f32 %v1657_v3, %v1231_v7 }
 0x8b1   : > { %v1233_v14 = vadd.f32 %v1657_v3, %v1232_v11 }
 0x8b3   : > { %v1237_v17 = vsel %vm1236_vm11, %v1657_v3, %v1233_v14 }
 0x8b4   : > { %v1242_v18 = vsel %vm1239_vm12, %v1241_v16, %v1237_v17 }
 0x8b5   : > { %v1245_v20 = vmul.f32 %v1242_v18, %v1202_v52 }
 0x8b7   : > { %v1246_v21 = vpack.c.bf16 %v1245_v20, %v1244_v19 }
 0x8b9   : > { %1323 = vmatmul.bf16.vlgmr.msrb.gmra.mxu3 %v1246_v21 }
 0x93c   : > { %v1324_v23 = vpop.f32.mrf.mxu3 }
 0x93d   : > { %v1325_v24 = vadd.f32 %v1607_v22, %v1324_v23 }
 0x93f   : > { %v1329_v25 = vadd.f32 %v1325_v24, %v2047_v57 }
 0x941   : > { %1331 = vst.msk [vmem:[%s449_s30] sm:$0xff] %vm462_vm0, %v1329_v25 }
 0x944   : > { %v1326_v26 = vpop.f32.mrf.mxu3 }
 0x945   : > { %v1327_v27 = vadd.f32 %v1607_v22, %v1326_v26 }
 0x947   : > { %v1330_v28 = vadd.f32 %v1327_v27, %v2052_v50 }
 0x949   : > { %1332 = vst.msk [vmem:[%s449_s30 + $0x8] sm:$0xff] %vm462_vm0, %v1330_v28 }
 0x94a   : > { %1715 = shalt.err (!%p1712_p8)
}
 0x94b   : > { %s1772_s20 = smov 128   ;;  %s2166_s30 = smov 8  }
 0x94c   : > { %1538 = dma.vmem_to_hbm [thread:$0]  (%p1881_p5), %s1347_s21, 256, %s1349_s1, %s1334_s29, %s1772_s20, %s1772_s20, %s2166_s30  }
 0x94d PF: > { %p1550_p9 = scmp.ge.s32.totalorder %s1754_s28, 2  ;;  %s1363_s23 = sand.u32 1, %s1742_s25  }
 0x94e   : > { %s1364_s24 = scalar_lea.sflag [#allocation5], %s1363_s23 }
 0x94f   : > { %p1545_p10 = pnand %p1550_p9, %p1885_p6 }
 0x951   : > { %p1546_p11 = pneg %p1545_p10 }
 0x953   : > { %1737 = dma.done.wait (%p1546_p11), %s1364_s24, 256  }
 0x954   : > { %1739 = vsyncadd (%p1546_p11), %s1364_s24, 4294967040  ;;  %s2167_s17 = sld [smem:[#allocation9_spill]]  ;;  %p24_p12 = scmp.ge.s32.totalorder %s1868_s14, 4  }
 0x955   : > { %s2168_s25 = smov %s1746_s26  ;;  %s2169_s26 = smov %s1750_s27 }
 0x956   : > { %s2171_s28 = smov %s1868_s14  ;;  %26 = sbr.rel (!%p24_p12) target bundleno = 7 (0x7), region = 112 }
 0x95a   : > { %s2170_s27 = smov %s2167_s17 }
 0x95b   :  { %1370 = vsyncpa [#allocation4], 1 }
 0x95c   :  { %1372 = vsyncpa [#allocation4 + $0x1], 1 }
 0x95d   :  { %1373 = vsyncpa [#allocation5], 1 }
 0x95e   :  { %1375 = vsyncpa [#allocation5 + $0x1], 1 }

</bundles_post_ra>
